<compile_context>
chip_gen: v7x
topology: tpu7x:2x2x1
jax: 0.10.0
libtpu: 0.0.40
codegen_flags: <defaults>
</compile_context>

<pallas_src>
import jax
import jax.numpy as jnp
from jax.experimental import pallas as pl
from jax.experimental.pallas import tpu as pltpu

TB_MAX = 512  # default batch tile (rows per grid step); sweep 512-2048 at scale


def _fullmodel_kernel(x1_ref, x2_ref, w1_ref, w2_ref, b1_ref, w3_ref, b3_ref,
                      t_ref, out_ref, lpart_ref):
    # ---- model forward --------------------------------------------------
    # Fused two-input layer via block decomposition (bf16 in, f32 accumulate):
    #   h = [x1 | x2] @ [W1; W2] = x1 @ W1 + x2 @ W2
    h = jnp.dot(x1_ref[...], w1_ref[...], preferred_element_type=jnp.float32)
    h = h + jnp.dot(x2_ref[...], w2_ref[...], preferred_element_type=jnp.float32)
    h = jnp.maximum(h + b1_ref[...], 0.0)                # bias + ReLU in f32
    y = jnp.dot(h.astype(w3_ref.dtype), w3_ref[...],
                preferred_element_type=jnp.float32) + b3_ref[...]
    out_ref[...] = y.astype(out_ref.dtype)               # lane-dense (TB, O) store

    # ---- loss partials ---------------------------------------------------
    # Per-(sublane, lane) sum of squared error over this block's TB rows:
    # reshape (TB, O) -> (TB//8, 8, O) is layout-preserving, the axis-0 sum is
    # plain VPU vreg adds (no XLU cross-lane reduce, no broadcast).
    diff = y - t_ref[...]
    sq = diff * diff
    tb, o = sq.shape
    lpart_ref[...] = jnp.sum(sq.reshape(tb // 8, 8, o), axis=0)


def fullmodel_forward(x1, x2, params, targets, *, tb_max=TB_MAX):
    """Returns (loss of shape (1,), outputs of shape (B, O)) — matches the
    PyTorch (torch.unsqueeze(loss, 0), outputs) contract."""
    w1, w2, b1, w3, b3 = params
    B, D1 = x1.shape
    D2 = x2.shape[1]
    H = w1.shape[1]
    O = w3.shape[1]

    tb = min(B, tb_max)
    # TODO(synk): for ragged batches, pad + mask padded rows out of the SSE
    # partials and divide by the true row count (padded rows would otherwise
    # silently bias the MSE).
    assert B % tb == 0, "pad batch to a multiple of the batch tile"
    assert tb % 8 == 0, "batch tile must be sublane-aligned"
    gb = B // tb

    outputs, lpart = pl.pallas_call(
        _fullmodel_kernel,
        out_shape=(
            jax.ShapeDtypeStruct((B, O), jnp.float32),        # model outputs
            jax.ShapeDtypeStruct((gb * 8, O), jnp.float32),   # per-block SSE partials
        ),
        grid_spec=pltpu.PrefetchScalarGridSpec(
            num_scalar_prefetch=0,
            grid=(gb,),
            in_specs=[
                pl.BlockSpec((tb, D1), lambda i: (i, 0)),     # x1     : batch tile (bf16)
                pl.BlockSpec((tb, D2), lambda i: (i, 0)),     # x2     : batch tile (bf16)
                pl.BlockSpec((D1, H), lambda i: (0, 0)),      # W1     : VMEM-resident
                pl.BlockSpec((D2, H), lambda i: (0, 0)),      # W2     : VMEM-resident
                pl.BlockSpec((1, H), lambda i: (0, 0)),       # b1     : VMEM-resident
                pl.BlockSpec((H, O), lambda i: (0, 0)),       # W3     : VMEM-resident
                pl.BlockSpec((1, O), lambda i: (0, 0)),       # b3     : VMEM-resident
                pl.BlockSpec((tb, O), lambda i: (i, 0)),      # targets: batch tile (f32)
            ],
            out_specs=(
                pl.BlockSpec((tb, O), lambda i: (i, 0)),      # outputs tile
                pl.BlockSpec((8, O), lambda i: (i, 0)),       # SSE partial tile
            ),
        ),
        compiler_params=pltpu.CompilerParams(
            dimension_semantics=("parallel",)),               # megacore batch split
    )(x1, x2, w1, w2, b1, w3, b3, targets)

    # Finalize loss with one dense reduce (no strided gather); partials already
    # hold sums of squared error, so dividing by B*O yields the mean.
    loss = (jnp.sum(lpart) / (B * O)).reshape(1)              # unsqueeze(loss, 0)
    return loss, outputs


def init_params(key, d1, d2, hidden, out):
    k1, k2, k3 = jax.random.split(key, 3)
    w1 = (jax.random.normal(k1, (d1, hidden), jnp.float32) * 0.1).astype(jnp.bfloat16)
    w2 = (jax.random.normal(k2, (d2, hidden), jnp.float32) * 0.1).astype(jnp.bfloat16)
    b1 = jnp.zeros((1, hidden), jnp.float32)
    w3 = (jax.random.normal(k3, (hidden, out), jnp.float32) * 0.1).astype(jnp.bfloat16)
    b3 = jnp.zeros((1, out), jnp.float32)
    return (w1, w2, b1, w3, b3)


if __name__ == "__main__":
    key = jax.random.PRNGKey(0)
    kx1, kx2, kt, kp = jax.random.split(key, 4)

    # Lane-dense config: fused K = 128, H = 128, O = 128; B/TB = 8 grid steps
    # so each TensorCore pipelines several steps under the parallel grid axis.
    B, D1, D2, H, O = 4096, 64, 64, 128, 128
    x1 = jax.random.normal(kx1, (B, D1), jnp.float32).astype(jnp.bfloat16)
    x2 = jax.random.normal(kx2, (B, D2), jnp.float32).astype(jnp.bfloat16)
    targets = jax.random.normal(kt, (B, O), jnp.float32)
    params = init_params(kp, D1, D2, H, O)

    loss, outputs = jax.jit(fullmodel_forward)(x1, x2, params, targets)
    jax.block_until_ready((loss, outputs))

    # sanity check against a plain-JAX reference using the same mixed precision
    w1, w2, b1, w3, b3 = params
    h_ref = jnp.maximum(
        jnp.dot(x1, w1, preferred_element_type=jnp.float32)
        + jnp.dot(x2, w2, preferred_element_type=jnp.float32) + b1, 0.0)
    y_ref = jnp.dot(h_ref.astype(jnp.bfloat16), w3,
                    preferred_element_type=jnp.float32) + b3
    loss_ref = jnp.mean((y_ref - targets) ** 2)[None]

    assert loss.shape == (1,) and outputs.shape == (B, O)
    assert jnp.allclose(outputs, y_ref, atol=2e-2, rtol=2e-2)
    assert jnp.allclose(loss, loss_ref, atol=2e-2, rtol=2e-2)

    print("KERNEL_OK")
</pallas_src>

<mosaic_0001>
module attributes {stable_mosaic.version = 11 : i64} {
  func.func @_fullmodel_kernel(%arg0: i32, %arg1: memref<512x64xbf16, #tpu.memory_space<vmem>>, %arg2: memref<512x64xbf16, #tpu.memory_space<vmem>>, %arg3: memref<64x128xbf16, #tpu.memory_space<vmem>>, %arg4: memref<64x128xbf16, #tpu.memory_space<vmem>>, %arg5: memref<1x128xf32, #tpu.memory_space<vmem>>, %arg6: memref<128x128xbf16, #tpu.memory_space<vmem>>, %arg7: memref<1x128xf32, #tpu.memory_space<vmem>>, %arg8: memref<512x128xf32, #tpu.memory_space<vmem>>, %arg9: memref<512x128xf32, #tpu.memory_space<vmem>>, %arg10: memref<8x128xf32, #tpu.memory_space<vmem>>) attributes {dimension_semantics = [#tpu.dimension_semantics<parallel>], iteration_bounds = array<i64: 8>, scalar_prefetch = 0 : i64, scratch_operands = 0 : i64, tpu.core_type = #tpu.core_type<tc>, window_params = [{transform_indices = @transform_0, window_bounds = array<i64: 512, 64>}, {transform_indices = @transform_1, window_bounds = array<i64: 512, 64>}, {pipeline_mode = #tpu.pipeline_mode<synchronous>, transform_indices = @transform_2, window_bounds = array<i64: 64, 128>}, {pipeline_mode = #tpu.pipeline_mode<synchronous>, transform_indices = @transform_3, window_bounds = array<i64: 64, 128>}, {pipeline_mode = #tpu.pipeline_mode<synchronous>, transform_indices = @transform_4, window_bounds = array<i64: 1, 128>}, {pipeline_mode = #tpu.pipeline_mode<synchronous>, transform_indices = @transform_5, window_bounds = array<i64: 128, 128>}, {pipeline_mode = #tpu.pipeline_mode<synchronous>, transform_indices = @transform_6, window_bounds = array<i64: 1, 128>}, {transform_indices = @transform_7, window_bounds = array<i64: 512, 128>}, {transform_indices = @transform_8, window_bounds = array<i64: 512, 128>}, {transform_indices = @transform_9, window_bounds = array<i64: 8, 128>}]} {
    %c0 = arith.constant 0 : index
    %c0_0 = arith.constant 0 : index
    %0 = vector.load %arg1[%c0, %c0_0] : memref<512x64xbf16, #tpu.memory_space<vmem>>, vector<512x64xbf16>
    %c0_1 = arith.constant 0 : index
    %c0_2 = arith.constant 0 : index
    %1 = vector.load %arg3[%c0_1, %c0_2] : memref<64x128xbf16, #tpu.memory_space<vmem>>, vector<64x128xbf16>
    %cst = arith.constant dense<0.000000e+00> : vector<512x128xf32>
    %2 = tpu.matmul %0, %1, %cst {dimension_numbers = #tpu.dot_dimension_numbers<[1], [0], [0], [1], [0, 0, 1, 1], [], []>} : vector<512x64xbf16>, vector<64x128xbf16>, vector<512x128xf32> -> vector<512x128xf32>
    %c0_3 = arith.constant 0 : index
    %c0_4 = arith.constant 0 : index
    %3 = vector.load %arg2[%c0_3, %c0_4] : memref<512x64xbf16, #tpu.memory_space<vmem>>, vector<512x64xbf16>
    %c0_5 = arith.constant 0 : index
    %c0_6 = arith.constant 0 : index
    %4 = vector.load %arg4[%c0_5, %c0_6] : memref<64x128xbf16, #tpu.memory_space<vmem>>, vector<64x128xbf16>
    %cst_7 = arith.constant dense<0.000000e+00> : vector<512x128xf32>
    %5 = tpu.matmul %3, %4, %cst_7 {dimension_numbers = #tpu.dot_dimension_numbers<[1], [0], [0], [1], [0, 0, 1, 1], [], []>} : vector<512x64xbf16>, vector<64x128xbf16>, vector<512x128xf32> -> vector<512x128xf32>
    %6 = arith.addf %2, %5 : vector<512x128xf32>
    %c0_8 = arith.constant 0 : index
    %c0_9 = arith.constant 0 : index
    %7 = vector.load %arg5[%c0_8, %c0_9] : memref<1x128xf32, #tpu.memory_space<vmem>>, vector<1x128xf32>
    %8 = vector.broadcast %7 : vector<1x128xf32> to vector<512x128xf32>
    %9 = arith.addf %6, %8 : vector<512x128xf32>
    %cst_10 = arith.constant 0.000000e+00 : f32
    %10 = vector.broadcast %cst_10 : f32 to vector<512x128xf32>
    %11 = arith.maximumf %9, %10 : vector<512x128xf32>
    %12 = arith.truncf %11 : vector<512x128xf32> to vector<512x128xbf16>
    %c0_11 = arith.constant 0 : index
    %c0_12 = arith.constant 0 : index
    %13 = vector.load %arg6[%c0_11, %c0_12] : memref<128x128xbf16, #tpu.memory_space<vmem>>, vector<128x128xbf16>
    %cst_13 = arith.constant dense<0.000000e+00> : vector<512x128xf32>
    %14 = tpu.matmul %12, %13, %cst_13 {dimension_numbers = #tpu.dot_dimension_numbers<[1], [0], [0], [1], [0, 0, 1, 1], [], []>} : vector<512x128xbf16>, vector<128x128xbf16>, vector<512x128xf32> -> vector<512x128xf32>
    %c0_14 = arith.constant 0 : index
    %c0_15 = arith.constant 0 : index
    %15 = vector.load %arg7[%c0_14, %c0_15] : memref<1x128xf32, #tpu.memory_space<vmem>>, vector<1x128xf32>
    %16 = vector.broadcast %15 : vector<1x128xf32> to vector<512x128xf32>
    %17 = arith.addf %14, %16 : vector<512x128xf32>
    %c0_16 = arith.constant 0 : index
    %c0_17 = arith.constant 0 : index
    %18 = vector.load %arg9[%c0_16, %c0_17] : memref<512x128xf32, #tpu.memory_space<vmem>>, vector<512x128xf32>
    tpu.vector_store %arg9[%c0_16, %c0_17], %17 {strides = array<i32>} : memref<512x128xf32, #tpu.memory_space<vmem>>, vector<512x128xf32>,
    %c0_18 = arith.constant 0 : index
    %c0_19 = arith.constant 0 : index
    %19 = vector.load %arg8[%c0_18, %c0_19] : memref<512x128xf32, #tpu.memory_space<vmem>>, vector<512x128xf32>
    %20 = arith.subf %17, %19 : vector<512x128xf32>
    %21 = arith.mulf %20, %20 : vector<512x128xf32>
    %22 = vector.shape_cast %21 : vector<512x128xf32> to vector<64x8x128xf32>
    %cst_20 = arith.constant dense<0.000000e+00> : vector<8x128xf32>
    %23 = vector.multi_reduction <add>, %22, %cst_20 [0] : vector<64x8x128xf32> to vector<8x128xf32>
    %c0_21 = arith.constant 0 : index
    %c0_22 = arith.constant 0 : index
    %24 = vector.load %arg10[%c0_21, %c0_22] : memref<8x128xf32, #tpu.memory_space<vmem>>, vector<8x128xf32>
    tpu.vector_store %arg10[%c0_21, %c0_22], %23 {strides = array<i32>} : memref<8x128xf32, #tpu.memory_space<vmem>>, vector<8x128xf32>,
    return
  }
  func.func @transform_0(%arg0: i32) -> (i32, i32) {
    %c0_i32 = arith.constant 0 : i32
    %c0_i32_0 = arith.constant 0 : i32
    return %arg0, %c0_i32 : i32, i32
  }
  func.func @transform_1(%arg0: i32) -> (i32, i32) {
    %c0_i32 = arith.constant 0 : i32
    %c0_i32_0 = arith.constant 0 : i32
    return %arg0, %c0_i32 : i32, i32
  }
  func.func @transform_2(%arg0: i32) -> (i32, i32) {
    %c0_i32 = arith.constant 0 : i32
    %c0_i32_0 = arith.constant 0 : i32
    %c0_i32_1 = arith.constant 0 : i32
    return %c0_i32, %c0_i32_0 : i32, i32
  }
  func.func @transform_3(%arg0: i32) -> (i32, i32) {
    %c0_i32 = arith.constant 0 : i32
    %c0_i32_0 = arith.constant 0 : i32
    %c0_i32_1 = arith.constant 0 : i32
    return %c0_i32, %c0_i32_0 : i32, i32
  }
  func.func @transform_4(%arg0: i32) -> (i32, i32) {
    %c0_i32 = arith.constant 0 : i32
    %c0_i32_0 = arith.constant 0 : i32
    %c0_i32_1 = arith.constant 0 : i32
    return %c0_i32, %c0_i32_0 : i32, i32
  }
  func.func @transform_5(%arg0: i32) -> (i32, i32) {
    %c0_i32 = arith.constant 0 : i32
    %c0_i32_0 = arith.constant 0 : i32
    %c0_i32_1 = arith.constant 0 : i32
    return %c0_i32, %c0_i32_0 : i32, i32
  }
  func.func @transform_6(%arg0: i32) -> (i32, i32) {
    %c0_i32 = arith.constant 0 : i32
    %c0_i32_0 = arith.constant 0 : i32
    %c0_i32_1 = arith.constant 0 : i32
    return %c0_i32, %c0_i32_0 : i32, i32
  }
  func.func @transform_7(%arg0: i32) -> (i32, i32) {
    %c0_i32 = arith.constant 0 : i32
    %c0_i32_0 = arith.constant 0 : i32
    return %arg0, %c0_i32 : i32, i32
  }
  func.func @transform_8(%arg0: i32) -> (i32, i32) {
    %c0_i32 = arith.constant 0 : i32
    %c0_i32_0 = arith.constant 0 : i32
    return %arg0, %c0_i32 : i32, i32
  }
  func.func @transform_9(%arg0: i32) -> (i32, i32) {
    %c0_i32 = arith.constant 0 : i32
    %c0_i32_0 = arith.constant 0 : i32
    return %arg0, %c0_i32 : i32, i32
  }
}

</mosaic_0001>

<bundles_post_ra>
// kernel: fullmodel_forward.1
= control target key start
LH: loop header
LB: loop body
LE: loop exit
PB: predicated region body
PF: predicated region fallthrough
CT: control target
= control target key end

     0   :  { %15 = vsyncpa [#allocation3], 0  ;;  %s4134_s0 = inlined_call_operand.vmem [shape: bf16[4096,64], index: 0, kind: input, shape index: {}]   ;;  %s4135_s1 = inlined_call_operand.vmem [shape: bf16[4096,64], index: 1, kind: input, shape index: {}]   ;;  %s4136_s2 = inlined_call_operand.vmem [shape: bf16[64,128], index: 2, kind: input, shape index: {}]   ;;  %s4137_s3 = inlined_call_operand.vmem [shape: bf16[64,128], index: 3, kind: input, shape index: {}]   ;;  %s4138_s4 = inlined_call_operand.vmem [shape: f32[1,128], index: 4, kind: input, shape index: {}]   ;;  %s4139_s5 = inlined_call_operand.vmem [shape: bf16[128,128], index: 5, kind: input, shape index: {}]   ;;  %s4140_s6 = inlined_call_operand.vmem [shape: f32[1,128], index: 6, kind: input, shape index: {}]   ;;  %s4141_s7 = inlined_call_operand.vmem [shape: f32[4096,128], index: 7, kind: input, shape index: {}]   ;;  %s4142_s8 = inlined_call_operand.hbm [shape: f32[4096,128], index: 8, kind: output, shape index: {0}]   ;;  %s4143_s9 = inlined_call_operand.vmem [shape: f32[64,128], index: 9, kind: output, shape index: {1}]  }
   0x1   :  { %17 = vsyncpa [#allocation3 + $0x1], 0  ;;  %s3461_s30 = smov 0   ;;  %s3463_s10 = smov 0  }
   0x2   :  { %s3465_s11 = smov 0   ;;  %s3467_s12 = smov 0  }
   0x3 LB: > { %s3482_s13 = sadd.s32 4294967295, %s3406_s12   ;;  %s2651_s14 = sadd.s32 4294967294, %s3406_s12   ;;  %s3406_s12 = sphi %s3467_s12, %s4149_s12   ;;  %s3402_s11 = sphi %s3465_s11, %s4148_s11   ;;  %s3398_s10 = sphi %s3463_s10, %s4147_s10   ;;  %s3394_s30 = sphi %s3461_s30, %s4146_s30  }
   0x4   : > { %s3486_s15 = sadd.s32 1, %s3406_s12   ;;  %s213_s16 = sadd.s32 1, %s3402_s11 }
   0x5   : > { %s210_s17 = ssub.s32 %s3406_s12, %s3486_s15  ;;  %p223_p0 = scmp.ne.s32.totalorder %s3402_s11, %s3398_s10 }
   0x6   : > { %p211_p1 = scmp.eq.s32.totalorder %s210_s17, 0  ;;  %p224_p2 = scmp.eq.s32.totalorder %s3482_s13, 7 }
   0x7   : > { %p229_p3 = scmp.ne.s32.totalorder %s3398_s10, %s3394_s30  ;;  %p230_p4 = scmp.eq.s32.totalorder %s2651_s14, 7 }
   0x8   : > { %s3497_s18 = scalar_select %p211_p1, %s3402_s11, %s213_s16  }
   0x9   : > { %p3499_p5 = por %p224_p2, %p223_p0  ;;  %p3503_p6 = por %p230_p4, %p229_p3 }
   0xa   : > { %p2654_p7 = scmp.ge.s32.totalorder %s3406_s12, 1  ;;  %p316_p8 = scmp.lt.s32.totalorder %s3406_s12, 9 }
   0xc   : > { %p317_p9 = pnand %p2654_p7, %p316_p8 }
   0xd   : > { %v3264_v0 = vld [vmem:[%s4137_s3] sm:$0xff] (!%p317_p9)   ;;  %s2656_s23 = sshll.u32 (!%p317_p9), %s3482_s13, 6  ;;  %v3265_v1 = vld [vmem:[%s4137_s3 + $0x8] sm:$0xff] (!%p317_p9)   ;;  %v3266_v2 = vld [vmem:[%s4137_s3 + $0x10] sm:$0xff] (!%p317_p9)   ;;  %vm718_vm0 = vcmask (!%p317_p9), 523264   ;;  %s357_s22 = sand.u32 (!%p317_p9), 1, %s3398_s10  }
   0xe   : > { %320 = sbr.rel (%p317_p9) target bundleno = 677 (0x2a5), region = 52  ;;  %p367_p10 = scmp.lt.s32.totalorder (!%p317_p9), %s2656_s23, 511  ;;  %2927 = vmatprep.subr.bf16.mxu0 (!%p317_p9), %v3264_v0  ;;  %3151 = vmatprep.subr.bf16.mxu1 (!%p317_p9), %v3264_v0  ;;  %v3267_v4 = vld [vmem:[%s4137_s3 + $0x18] sm:$0xff] (!%p317_p9)   ;;  %v3270_v5 = vld [vmem:[%s4136_s2] sm:$0xff] (!%p317_p9)   ;;  %v3275_v8 = vld [vmem:[%s4136_s2 + $0x8] sm:$0xff] (!%p317_p9)  }
   0xf   : > { %2928 = vmatpush3.bf16.msra.mxu0 (!%p317_p9), %v3264_v0  ;;  %3155 = vmatpush3.bf16.msra.mxu1 (!%p317_p9), %v3264_v0  ;;  %v3280_v9 = vld [vmem:[%s4136_s2 + $0x10] sm:$0xff] (!%p317_p9)   ;;  %v3285_v12 = vld [vmem:[%s4136_s2 + $0x18] sm:$0xff] (!%p317_p9)   ;;  %v3336_v36 = vld [vmem:[%s4139_s5] sm:$0xff] (!%p317_p9)   ;;  %s2814_s14 = sshll.u32 (!%p317_p9), %s3482_s13, 13  ;;  %p385_p11 = scmp.lt.s32.totalorder (!%p317_p9), %s3482_s13, 7 }
  0x10   : > { %2929 = vmatprep.subr.bf16.mxu0 (!%p317_p9), %v3265_v1  ;;  %3152 = vmatprep.subr.bf16.mxu1 (!%p317_p9), %v3265_v1  ;;  %v3337_v37 = vld [vmem:[%s4139_s5 + $0x8] sm:$0xff] (!%p317_p9)   ;;  %v3338_v40 = vld [vmem:[%s4139_s5 + $0x10] sm:$0xff] (!%p317_p9)   ;;  %v3339_v43 = vld [vmem:[%s4139_s5 + $0x18] sm:$0xff] (!%p317_p9)   ;;  %s4089_s25 = scalar_lea.sflag (!%p317_p9), [#allocation3], %s357_s22  ;;  %s3408_s29 = smov (!%p317_p9), [#allocation2]  }
  0x11   : > { %v3340_v45 = vld [vmem:[%s4139_s5 + $0x20] sm:$0xff] (!%p317_p9)   ;;  %v3341_v49 = vld [vmem:[%s4139_s5 + $0x28] sm:$0xff] (!%p317_p9)   ;;  %v3342_v51 = vld [vmem:[%s4139_s5 + $0x30] sm:$0xff] (!%p317_p9)  }
  0x13   : > { %2930 = vmatpush3.bf16.msra.mxu0 (!%p317_p9), %v3265_v1  ;;  %3156 = vmatpush3.bf16.msra.mxu1 (!%p317_p9), %v3265_v1 }
  0x14   : > { %2931 = vmatprep.subr.bf16.mxu0 (!%p317_p9), %v3266_v2  ;;  %3153 = vmatprep.subr.bf16.mxu1 (!%p317_p9), %v3266_v2 }
  0x15   : > { %s4151_s23 = smov (!%p367_p10, %s2656_s23), 511  ;;  %s4153_s13 = smov (!%p385_p11, %s3482_s13), 7 }
  0x16   : > { %s2657_s28 = sshll.u32 %s4151_s23, 2  ;;  %s2661_s24 = sshll.u32 %s4151_s23, 3 }
  0x17   : > { %s3525_s16 = scalar_lea.vmem %s4135_s1, %s2657_s28  ;;  %2932 = vmatpush3.bf16.msra.mxu0 %v3266_v2  ;;  %3157 = vmatpush3.bf16.msra.mxu1 %v3266_v2  ;;  %s3549_s21 = scalar_lea.vmem %s4134_s0, %s2657_s28 }
  0x18   : > { %v3268_v3 = vld [vmem:[%s3525_s16] sm:$0xff]   ;;  %2933 = vmatprep.subr.bf16.mxu0 %v3267_v4  ;;  %3154 = vmatprep.subr.bf16.mxu1 %v3267_v4  ;;  %v3269_v6 = vld [vmem:[%s3525_s16 + $0x8] sm:$0xff]   ;;  %v3271_v7 = vld [vmem:[%s3525_s16 + $0x10] sm:$0xff]   ;;  %s2655_s28 = sshll.u32 %s357_s22, 9  ;;  %s3871_s27 = scalar_lea.vmem %s4141_s7, %s2661_s24 }
  0x19   : > { %2935 = vmatprep.mubr.msk.bf16.mxu0 %vm718_vm0, %v3268_v3  ;;  %v3272_v10 = vld [vmem:[%s3525_s16 + $0x18] sm:$0xff]   ;;  %v3273_v11 = vld [vmem:[%s3525_s16 + $0x20] sm:$0xff]   ;;  %v3274_v13 = vld [vmem:[%s3525_s16 + $0x28] sm:$0xff]   ;;  %s3881_s23 = scalar_lea.vmem [#allocation2], %s2655_s28  ;;  %s4073_s28 = scalar_lea.hbm %s4142_s8, %s2814_s14 }
  0x1a   : > { %v3276_v14 = vld [vmem:[%s3525_s16 + $0x30] sm:$0xff]   ;;  %v3277_v15 = vld [vmem:[%s3525_s16 + $0x38] sm:$0xff]   ;;  %v3278_v16 = vld [vmem:[%s3525_s16 + $0x40] sm:$0xff]  }
  0x1b   : > { %2934 = vmatpush3.bf16.msra.mxu0 %v3267_v4  ;;  %3158 = vmatpush3.bf16.msra.mxu1 %v3267_v4  ;;  %v3304_v17 = vld [vmem:[%s3525_s16 + $0x80] sm:$0xff]   ;;  %v3305_v18 = vld [vmem:[%s3525_s16 + $0x88] sm:$0xff]   ;;  %v3308_v19 = vld [vmem:[%s3525_s16 + $0x90] sm:$0xff]  }
  0x1c   : > { %2999 = vmatprep.subr.bf16.mxu0 %v3270_v5  ;;  %2967 = vmatprep.mubr.msk.bf16.mxu1 %vm718_vm0, %v3304_v17  ;;  %v3279_v20 = vld [vmem:[%s3525_s16 + $0x48] sm:$0xff]   ;;  %v3281_v21 = vld [vmem:[%s3525_s16 + $0x50] sm:$0xff]   ;;  %v3309_v22 = vld [vmem:[%s3525_s16 + $0x98] sm:$0xff]  }
  0x1d   : > { %v3312_v23 = vld [vmem:[%s3525_s16 + $0xa0] sm:$0xff]   ;;  %v3282_v24 = vld [vmem:[%s3525_s16 + $0x58] sm:$0xff]   ;;  %v3313_v26 = vld [vmem:[%s3525_s16 + $0xa8] sm:$0xff]   ;;  %3071 = vmatprep.subr.bf16.mxu1 %v3336_v36 }
  0x1e   : > { %2936 = vmatmul.mubr.msk.bf16.vlgmr.msra.gmra.mrb[0].mxu0 %vm718_vm0, %v3269_v6  ;;  %2968 = vmatmul.mubr.msk.bf16.vlgmr.msra.gmra.mrb[0].mxu1 %vm718_vm0, %v3305_v18  ;;  %v3283_v25 = vld [vmem:[%s3525_s16 + $0x60] sm:$0xff]   ;;  %v3316_v27 = vld [vmem:[%s3525_s16 + $0xb0] sm:$0xff]   ;;  %v3284_v28 = vld [vmem:[%s3525_s16 + $0x68] sm:$0xff]  }
  0x1f   : > { %3000 = vmatpush3.bf16.msra.mxu0 %v3270_v5  ;;  %2939 = vmatprep.mubr.msk.bf16.mxu0 %vm718_vm0, %v3271_v7  ;;  %v3286_v29 = vld [vmem:[%s3525_s16 + $0x70] sm:$0xff]   ;;  %v3317_v30 = vld [vmem:[%s3525_s16 + $0xb8] sm:$0xff]   ;;  %v3320_v31 = vld [vmem:[%s3525_s16 + $0xc0] sm:$0xff]  }
  0x20   : > { %3001 = vmatprep.subr.bf16.mxu0 %v3275_v8  ;;  %2971 = vmatprep.mubr.msk.bf16.mxu1 %vm718_vm0, %v3308_v19  ;;  %v3287_v32 = vld [vmem:[%s3525_s16 + $0x78] sm:$0xff]   ;;  %v3288_v33 = vld [vmem:[%s3549_s21] sm:$0xff]   ;;  %v3321_v34 = vld [vmem:[%s3525_s16 + $0xc8] sm:$0xff]  }
  0x21   : > { %v3324_v35 = vld [vmem:[%s3525_s16 + $0xd0] sm:$0xff]   ;;  %v3289_v38 = vld [vmem:[%s3549_s21 + $0x8] sm:$0xff]   ;;  %3072 = vmatpush3.bf16.msra.mxu1 %v3336_v36  ;;  %v3325_v41 = vld [vmem:[%s3525_s16 + $0xd8] sm:$0xff]  }
  0x22   : > { %v3290_v39 = vld [vmem:[%s3549_s21 + $0x10] sm:$0xff]   ;;  %3073 = vmatprep.subr.bf16.mxu1 %v3337_v37  ;;  %v3328_v42 = vld [vmem:[%s3525_s16 + $0xe0] sm:$0xff]   ;;  %v3291_v44 = vld [vmem:[%s3549_s21 + $0x18] sm:$0xff]  }
  0x23   : > { %3002 = vmatpush3.bf16.msra.mxu0 %v3275_v8  ;;  %v3292_v46 = vld [vmem:[%s3549_s21 + $0x20] sm:$0xff]   ;;  %v3329_v47 = vld [vmem:[%s3525_s16 + $0xe8] sm:$0xff]   ;;  %v3332_v48 = vld [vmem:[%s3525_s16 + $0xf0] sm:$0xff]  }
  0x24   : > { %3003 = vmatprep.subr.bf16.mxu0 %v3280_v9  ;;  %v3293_v50 = vld [vmem:[%s3549_s21 + $0x28] sm:$0xff]   ;;  %v3294_v52 = vld [vmem:[%s3549_s21 + $0x30] sm:$0xff]   ;;  %v3333_v53 = vld [vmem:[%s3525_s16 + $0xf8] sm:$0xff]   ;;  %s3348_s16 = sshll.u32 %s3408_s29, 4  ;;  %s3349_s16 = int_to_ptr.vmem [resolvable:$false] %s3348_s16 }
  0x25   : > { %3074 = vmatpush3.bf16.msra.mxu1 %v3337_v37  ;;  %v3295_v54 = vld [vmem:[%s3549_s21 + $0x38] sm:$0xff]   ;;  %v3296_v55 = vld [vmem:[%s3549_s21 + $0x40] sm:$0xff]   ;;  %v3297_v56 = vld [vmem:[%s3549_s21 + $0x48] sm:$0xff]  }
  0x26   : > { %2940 = vmatmul.mubr.msk.bf16.gmra.mrb[4].mxu0 %vm718_vm0, %v3272_v10  ;;  %2972 = vmatmul.mubr.msk.bf16.gmra.mrb[4].mxu1 %vm718_vm0, %v3309_v22  ;;  %v3298_v57 = vld [vmem:[%s3549_s21 + $0x50] sm:$0xff]   ;;  %v3299_v58 = vld [vmem:[%s3549_s21 + $0x58] sm:$0xff]   ;;  %v3300_v59 = vld [vmem:[%s3549_s21 + $0x60] sm:$0xff]  }
  0x27   : > { %2943 = vmatprep.mubr.msk.bf16.mxu0 %vm718_vm0, %v3273_v11  ;;  %3004 = vmatpush3.bf16.msra.mxu0 %v3280_v9  ;;  %v3301_v60 = vld [vmem:[%s3549_s21 + $0x68] sm:$0xff]   ;;  %v3302_v61 = vld [vmem:[%s3549_s21 + $0x70] sm:$0xff]   ;;  %v3303_v62 = vld [vmem:[%s3549_s21 + $0x78] sm:$0xff]  }
  0x28   : > { %3005 = vmatprep.subr.bf16.mxu0 %v3285_v12  ;;  %2975 = vmatprep.mubr.msk.bf16.mxu1 %vm718_vm0, %v3312_v23  ;;  %v3306_v63 = vld [vmem:[%s3549_s21 + $0x80] sm:$0xff]   ;;  %v3307_v0 = vld [vmem:[%s3549_s21 + $0x88] sm:$0xff]   ;;  %v3310_v1 = vld [vmem:[%s3549_s21 + $0x90] sm:$0xff]  }
  0x29   : > { %3075 = vmatprep.subr.bf16.mxu1 %v3338_v40  ;;  %v3311_v2 = vld [vmem:[%s3549_s21 + $0x98] sm:$0xff]   ;;  %v3314_v3 = vld [vmem:[%s3549_s21 + $0xa0] sm:$0xff]   ;;  %v3315_v4 = vld [vmem:[%s3549_s21 + $0xa8] sm:$0xff]  }
  0x2a   : > { %3076 = vmatpush3.bf16.msra.mxu1 %v3338_v40  ;;  %v3318_v5 = vld [vmem:[%s3549_s21 + $0xb0] sm:$0xff]   ;;  %v3319_v6 = vld [vmem:[%s3549_s21 + $0xb8] sm:$0xff]   ;;  %v3322_v7 = vld [vmem:[%s3549_s21 + $0xc0] sm:$0xff]  }
  0x2b   : > { %3006 = vmatpush3.bf16.msra.mxu0 %v3285_v12  ;;  %3077 = vmatprep.subr.bf16.mxu1 %v3339_v43  ;;  %v3343_v8 = vld [vmem:[%s4139_s5 + $0x38] sm:$0xff]   ;;  %v3323_v9 = vld [vmem:[%s3549_s21 + $0xc8] sm:$0xff]   ;;  %v3326_v10 = vld [vmem:[%s3549_s21 + $0xd0] sm:$0xff]  }
  0x2c   : > { %v3327_v11 = vld [vmem:[%s3549_s21 + $0xd8] sm:$0xff]   ;;  %v3330_v12 = vld [vmem:[%s3549_s21 + $0xe0] sm:$0xff]  }
  0x2d   : > { %v3742_v36 = vld [vmem:[%s4138_s4] ss:$0 sm:$0xff] }
  0x2e   : > { %2944 = vmatmul.mubr.msk.bf16.gmra.mrb[8].mxu0 %vm718_vm0, %v3274_v13  ;;  %2976 = vmatmul.mubr.msk.bf16.gmra.mrb[8].mxu1 %vm718_vm0, %v3313_v26  ;;  %v3331_v13 = vld [vmem:[%s3549_s21 + $0xe8] sm:$0xff]  }
  0x2f   : > { %2947 = vmatprep.mubr.msk.bf16.mxu0 %vm718_vm0, %v3276_v14  ;;  %2979 = vmatprep.mubr.msk.bf16.mxu1 %vm718_vm0, %v3316_v27  ;;  %v3334_v14 = vld [vmem:[%s3549_s21 + $0xf0] sm:$0xff]  }
  0x30   : > { %3078 = vmatpush3.bf16.msra.mxu1 %v3339_v43 }
  0x31   : > { %3079 = vmatprep.subr.bf16.mxu1 %v3340_v45 }
  0x34   : > { %3080 = vmatpush3.bf16.msra.mxu1 %v3340_v45 }
  0x35   : > { %3081 = vmatprep.subr.bf16.mxu1 %v3341_v49 }
  0x36   : > { %2948 = vmatmul.mubr.msk.bf16.gmra.mrb[12].mxu0 %vm718_vm0, %v3277_v15  ;;  %2980 = vmatmul.mubr.msk.bf16.gmra.mrb[12].mxu1 %vm718_vm0, %v3317_v30  ;;  %v3335_v15 = vld [vmem:[%s3549_s21 + $0xf8] sm:$0xff]   ;;  %s2538_s21 = sshll.u32 %s3881_s23, 4  ;;  %s4075_s21 = int_to_ptr.vmem [resolvable:$true] %s2538_s21 }
  0x37   : > { %2951 = vmatprep.mubr.msk.bf16.mxu0 %vm718_vm0, %v3278_v16  ;;  %2983 = vmatprep.mubr.msk.bf16.mxu1 %vm718_vm0, %v3320_v31  ;;  %s3344_s26 = scalar_lea.vmem %s4075_s21, 8192  ;;  %p3351_p1 = scmp.lt.s32.totalorder %s4075_s21, %s3349_s16 }
  0x38   : > { %3082 = vmatpush3.bf16.msra.mxu1 %v3341_v49  ;;  %p3345_p12 = scmp.ne.s32.totalorder %s4075_s21, %s3344_s26 }
  0x39   : > { %3083 = vmatprep.subr.bf16.mxu1 %v3342_v51 }
  0x3a   : > { %p3346_p13 = pnand %p3345_p12, %p3499_p5 }
  0x3c   : > { %3084 = vmatpush3.bf16.msra.mxu1 %v3342_v51  ;;  %p3347_p0 = pneg %p3346_p13 }
  0x3d   : > { %3085 = vmatprep.subr.bf16.mxu1 %v3343_v8 }
  0x3e   : > { %2952 = vmatmul.mubr.msk.bf16.gmra.mrb[16].mxu0 %vm718_vm0, %v3279_v20  ;;  %2984 = vmatmul.mubr.msk.bf16.gmra.mrb[16].mxu1 %vm718_vm0, %v3321_v34 }
  0x3f   : > { %2955 = vmatprep.mubr.msk.bf16.mxu0 %vm718_vm0, %v3281_v21  ;;  %2987 = vmatprep.mubr.msk.bf16.mxu1 %vm718_vm0, %v3324_v35 }
  0x40   : > { %3086 = vmatpush3.bf16.msra.mxu1 %v3343_v8 }
  0x46   : > { %2956 = vmatmul.mubr.msk.bf16.gmra.mrb[20].mxu0 %vm718_vm0, %v3282_v24  ;;  %2988 = vmatmul.mubr.msk.bf16.gmra.mrb[20].mxu1 %vm718_vm0, %v3325_v41 }
  0x47   : > { %2959 = vmatprep.mubr.msk.bf16.mxu0 %vm718_vm0, %v3283_v25  ;;  %2991 = vmatprep.mubr.msk.bf16.mxu1 %vm718_vm0, %v3328_v42 }
  0x4e   : > { %2960 = vmatmul.mubr.msk.bf16.gmra.mrb[24].mxu0 %vm718_vm0, %v3284_v28  ;;  %2992 = vmatmul.mubr.msk.bf16.gmra.mrb[24].mxu1 %vm718_vm0, %v3329_v47 }
  0x4f   : > { %2963 = vmatprep.mubr.msk.bf16.mxu0 %vm718_vm0, %v3286_v29  ;;  %2995 = vmatprep.mubr.msk.bf16.mxu1 %vm718_vm0, %v3332_v48 }
  0x56   : > { %2964 = vmatmul.mubr.msk.bf16.gmra.mrb[28].mxu0 %vm718_vm0, %v3287_v32  ;;  %2996 = vmatmul.mubr.msk.bf16.gmra.mrb[28].mxu1 %vm718_vm0, %v3333_v53 }
  0x57   : > { %3007 = vmatprep.mubr.msk.bf16.mxu0 %vm718_vm0, %v3288_v33 }
  0x5e   : > { %3008 = vmatmul.mubr.msk.bf16.vlgmr.msra.gmra.mrb[0].mxu0 %vm718_vm0, %v3289_v38 }
  0x5f   : > { %3011 = vmatprep.mubr.msk.bf16.mxu0 %vm718_vm0, %v3290_v39 }
  0x66   : > { %3012 = vmatmul.mubr.msk.bf16.gmra.mrb[4].mxu0 %vm718_vm0, %v3291_v44 }
  0x67   : > { %3015 = vmatprep.mubr.msk.bf16.mxu0 %vm718_vm0, %v3292_v46 }
  0x6e   : > { %3016 = vmatmul.mubr.msk.bf16.gmra.mrb[8].mxu0 %vm718_vm0, %v3293_v50 }
  0x6f   : > { %3019 = vmatprep.mubr.msk.bf16.mxu0 %vm718_vm0, %v3294_v52 }
  0x76   : > { %3020 = vmatmul.mubr.msk.bf16.gmra.mrb[12].mxu0 %vm718_vm0, %v3295_v54 }
  0x77   : > { %3023 = vmatprep.mubr.msk.bf16.mxu0 %vm718_vm0, %v3296_v55 }
  0x7e   : > { %3024 = vmatmul.mubr.msk.bf16.gmra.mrb[16].mxu0 %vm718_vm0, %v3297_v56 }
  0x7f   : > { %3027 = vmatprep.mubr.msk.bf16.mxu0 %vm718_vm0, %v3298_v57 }
  0x86   : > { %3028 = vmatmul.mubr.msk.bf16.gmra.mrb[20].mxu0 %vm718_vm0, %v3299_v58 }
  0x87   : > { %3031 = vmatprep.mubr.msk.bf16.mxu0 %vm718_vm0, %v3300_v59 }
  0x8e   : > { %3032 = vmatmul.mubr.msk.bf16.gmra.mrb[24].mxu0 %vm718_vm0, %v3301_v60 }
  0x8f   : > { %3035 = vmatprep.mubr.msk.bf16.mxu0 %vm718_vm0, %v3302_v61 }
  0x96   : > { %3036 = vmatmul.mubr.msk.bf16.gmra.mrb[28].mxu0 %vm718_vm0, %v3303_v62 }
  0x97   : > { %3039 = vmatprep.mubr.msk.bf16.mxu0 %vm718_vm0, %v3306_v63 }
  0x9e   : > { %3040 = vmatmul.mubr.msk.bf16.gmra.mrb[32].mxu0 %vm718_vm0, %v3307_v0 }
  0x9f   : > { %3043 = vmatprep.mubr.msk.bf16.mxu0 %vm718_vm0, %v3310_v1 }
  0xa6   : > { %3044 = vmatmul.mubr.msk.bf16.gmra.mrb[36].mxu0 %vm718_vm0, %v3311_v2 }
  0xa7   : > { %3047 = vmatprep.mubr.msk.bf16.mxu0 %vm718_vm0, %v3314_v3 }
  0xae   : > { %3048 = vmatmul.mubr.msk.bf16.gmra.mrb[40].mxu0 %vm718_vm0, %v3315_v4 }
  0xaf   : > { %3051 = vmatprep.mubr.msk.bf16.mxu0 %vm718_vm0, %v3318_v5 }
  0xb6   : > { %3052 = vmatmul.mubr.msk.bf16.gmra.mrb[44].mxu0 %vm718_vm0, %v3319_v6 }
  0xb7   : > { %3055 = vmatprep.mubr.msk.bf16.mxu0 %vm718_vm0, %v3322_v7 }
  0xbe   : > { %3056 = vmatmul.mubr.msk.bf16.gmra.mrb[48].mxu0 %vm718_vm0, %v3323_v9 }
  0xbf   : > { %3059 = vmatprep.mubr.msk.bf16.mxu0 %vm718_vm0, %v3326_v10 }
  0xc6   : > { %3060 = vmatmul.mubr.msk.bf16.gmra.mrb[52].mxu0 %vm718_vm0, %v3327_v11 }
  0xc7   : > { %3063 = vmatprep.mubr.msk.bf16.mxu0 %vm718_vm0, %v3330_v12 }
  0xce   : > { %3064 = vmatmul.mubr.msk.bf16.gmra.mrb[56].mxu0 %vm718_vm0, %v3331_v13 }
  0xcf   : > { %3067 = vmatprep.mubr.msk.bf16.mxu0 %vm718_vm0, %v3334_v14 }
  0xd6   : > { %3068 = vmatmul.mubr.msk.bf16.gmra.mrb[60].mxu0 %vm718_vm0, %v3335_v15 }
  0xf1   : > { %v3699_v16 = vpop.f32.mrb[0].mxu1 }
  0xf2   : > { %v3701_v17 = vpop.f32.mrb[1].mxu1 }
  0xf3   : > { %v3703_v18 = vpop.f32.mrb[2].mxu1 }
  0xf4   : > { %v3705_v19 = vpop.f32.mrb[3].mxu1 }
  0xf9   : > { %v3707_v20 = vpop.f32.mrb[4].mxu1 }
  0xfa   : > { %v3709_v21 = vpop.f32.mrb[5].mxu1 }
  0xfb   : > { %v3711_v22 = vpop.f32.mrb[6].mxu1 }
  0xfc   : > { %v3713_v23 = vpop.f32.mrb[7].mxu1 }
 0x101   : > { %v3715_v24 = vpop.f32.mrb[8].mxu1 }
 0x102   : > { %v3717_v25 = vpop.f32.mrb[9].mxu1 }
 0x103   : > { %v3719_v26 = vpop.f32.mrb[10].mxu1 }
 0x104   : > { %v3721_v27 = vpop.f32.mrb[11].mxu1 }
 0x109   : > { %v3723_v28 = vpop.f32.mrb[12].mxu1 }
 0x10a   : > { %v3725_v29 = vpop.f32.mrb[13].mxu1 }
 0x10b   : > { %v3727_v30 = vpop.f32.mrb[14].mxu1 }
 0x10c   : > { %v3729_v31 = vpop.f32.mrb[15].mxu1 }
 0x111   : > { %v3731_v32 = vpop.f32.mrb[16].mxu1 }
 0x112   : > { %v3733_v33 = vpop.f32.mrb[17].mxu1 }
 0x113   : > { %v3735_v34 = vpop.f32.mrb[18].mxu1 }
 0x114   : > { %v3737_v35 = vpop.f32.mrb[19].mxu1 }
 0x119   : > { %v3745_v40 = vpop.f32.mrb[20].mxu1 }
 0x11a   : > { %v3748_v43 = vpop.f32.mrb[21].mxu1 }
 0x11b   : > { %v3751_v46 = vpop.f32.mrb[22].mxu1 }
 0x11c   : > { %v3754_v48 = vpop.f32.mrb[23].mxu1 }
 0x121   : > { %v3757_v58 = vpop.f32.mrb[24].mxu1 }
 0x122   : > { %v3760_v61 = vpop.f32.mrb[25].mxu1 }
 0x123   : > { %v3763_v0 = vpop.f32.mrb[26].mxu1 }
 0x124   : > { %v3766_v2 = vpop.f32.mrb[27].mxu1 }
 0x129   : > { %v3769_v12 = vpop.f32.mrb[28].mxu1 }
 0x12a   : > { %v3772_v15 = vpop.f32.mrb[29].mxu1 }
 0x131   : > { %v3009_v37 = vpop.f32.mrb[0].mxu0 }
 0x132   : > { %v1682_v38 = vadd.f32 %v3009_v37, %v3742_v36  ;;  %v1418_v39 = vpop.f32.mrb[1].mxu0 }
 0x133   : > { %v1680_v41 = vadd.f32 %v3742_v36, %v1418_v39  ;;  %v3010_v42 = vpop.f32.mrb[2].mxu0  ;;  %v3775_v39 = vpop.f32.mrb[30].mxu1 }
 0x134   : > { %v1683_v44 = vadd.f32 %v3010_v42, %v3742_v36  ;;  %v1421_v45 = vpop.f32.mrb[3].mxu0  ;;  %v1746_v49 = vmax.f32 %v1682_v38, 0.0  ;;  %v3778_v42 = vpop.f32.mrb[31].mxu1 }
 0x135   : > { %v1681_v47 = vadd.f32 %v3742_v36, %v1421_v45  ;;  %v1744_v51 = vmax.f32 %v1680_v41, 0.0 }
 0x136   : > { %v1747_v50 = vmax.f32 %v1683_v44, 0.0 }
 0x137   : > { %v1745_v52 = vmax.f32 %v1681_v47, 0.0 }
 0x138   : > { %v1809_v53 = vpack.c.bf16 %v1747_v50, %v1746_v49 }
 0x139   : > { %v1808_v54 = vpack.c.bf16 %v1745_v52, %v1744_v51  ;;  %v3013_v55 = vpop.f32.mrb[4].mxu0 }
 0x13a   : > { %v1686_v56 = vadd.f32 %v3013_v55, %v3742_v36  ;;  %v1434_v57 = vpop.f32.mrb[5].mxu0 }
 0x13b   : > { %v1684_v59 = vadd.f32 %v3742_v36, %v1434_v57  ;;  %v3014_v60 = vpop.f32.mrb[6].mxu0  ;;  %3087 = vmatprep.mubr.bf16.mxu1 %v1808_v54 }
 0x13c   : > { %v1687_v62 = vadd.f32 %v3014_v60, %v3742_v36  ;;  %v1437_v63 = vpop.f32.mrb[7].mxu0  ;;  %3088 = vmatmul.mubr.bf16.vlgmr.msra.gmra.mrb[32].mxu1 %v1809_v53  ;;  %v1750_v3 = vmax.f32 %v1686_v56, 0.0 }
 0x13d   : > { %v1685_v1 = vadd.f32 %v3742_v36, %v1437_v63  ;;  %v1748_v5 = vmax.f32 %v1684_v59, 0.0 }
 0x13e   : > { %v1751_v4 = vmax.f32 %v1687_v62, 0.0 }
 0x13f   : > { %v1749_v6 = vmax.f32 %v1685_v1, 0.0 }
 0x140   : > { %v1811_v7 = vpack.c.bf16 %v1751_v4, %v1750_v3 }
 0x141   : > { %v1810_v8 = vpack.c.bf16 %v1749_v6, %v1748_v5  ;;  %v3017_v9 = vpop.f32.mrb[8].mxu0 }
 0x142   : > { %v1690_v10 = vadd.f32 %v3017_v9, %v3742_v36  ;;  %v1450_v11 = vpop.f32.mrb[9].mxu0 }
 0x143   : > { %v1688_v13 = vadd.f32 %v3742_v36, %v1450_v11  ;;  %v3018_v14 = vpop.f32.mrb[10].mxu0  ;;  %3091 = vmatprep.mubr.bf16.mxu1 %v1810_v8 }
 0x144   : > { %v1691_v37 = vadd.f32 %v3018_v14, %v3742_v36  ;;  %v1453_v38 = vpop.f32.mrb[11].mxu0  ;;  %3092 = vmatmul.mubr.bf16.gmra.mrb[36].mxu1 %v1811_v7  ;;  %v1754_v44 = vmax.f32 %v1690_v10, 0.0 }
 0x145   : > { %v1689_v41 = vadd.f32 %v3742_v36, %v1453_v38  ;;  %v1752_v47 = vmax.f32 %v1688_v13, 0.0 }
 0x146   : > { %v1755_v45 = vmax.f32 %v1691_v37, 0.0 }
 0x147   : > { %v1753_v49 = vmax.f32 %v1689_v41, 0.0 }
 0x148   : > { %v1813_v50 = vpack.c.bf16 %v1755_v45, %v1754_v44 }
 0x149   : > { %v1812_v51 = vpack.c.bf16 %v1753_v49, %v1752_v47  ;;  %v3021_v52 = vpop.f32.mrb[12].mxu0 }
 0x14a   : > { %v1694_v53 = vadd.f32 %v3021_v52, %v3742_v36  ;;  %v1466_v54 = vpop.f32.mrb[13].mxu0 }
 0x14b   : > { %v1692_v55 = vadd.f32 %v3742_v36, %v1466_v54  ;;  %v3022_v56 = vpop.f32.mrb[14].mxu0  ;;  %3095 = vmatprep.mubr.bf16.mxu1 %v1812_v51 }
 0x14c   : > { %v1695_v57 = vadd.f32 %v3022_v56, %v3742_v36  ;;  %v1469_v59 = vpop.f32.mrb[15].mxu0  ;;  %3096 = vmatmul.mubr.bf16.gmra.mrb[40].mxu1 %v1813_v50  ;;  %v1758_v62 = vmax.f32 %v1694_v53, 0.0 }
 0x14d   : > { %v1693_v60 = vadd.f32 %v3742_v36, %v1469_v59  ;;  %v1756_v1 = vmax.f32 %v1692_v55, 0.0 }
 0x14e   : > { %v1759_v63 = vmax.f32 %v1695_v57, 0.0 }
 0x14f   : > { %v1757_v3 = vmax.f32 %v1693_v60, 0.0 }
 0x150   : > { %v1815_v4 = vpack.c.bf16 %v1759_v63, %v1758_v62 }
 0x151   : > { %v1814_v5 = vpack.c.bf16 %v1757_v3, %v1756_v1  ;;  %v3025_v6 = vpop.f32.mrb[16].mxu0 }
 0x152   : > { %v1698_v7 = vadd.f32 %v3025_v6, %v3742_v36  ;;  %v1482_v8 = vpop.f32.mrb[17].mxu0 }
 0x153   : > { %v1696_v9 = vadd.f32 %v3742_v36, %v1482_v8  ;;  %v3026_v10 = vpop.f32.mrb[18].mxu0  ;;  %3099 = vmatprep.mubr.bf16.mxu1 %v1814_v5 }
 0x154   : > { %v1699_v11 = vadd.f32 %v3026_v10, %v3742_v36  ;;  %v1485_v13 = vpop.f32.mrb[19].mxu0  ;;  %3100 = vmatmul.mubr.bf16.gmra.mrb[44].mxu1 %v1815_v4  ;;  %v1762_v37 = vmax.f32 %v1698_v7, 0.0 }
 0x155   : > { %v1697_v14 = vadd.f32 %v3742_v36, %v1485_v13  ;;  %v1760_v41 = vmax.f32 %v1696_v9, 0.0 }
 0x156   : > { %v1763_v38 = vmax.f32 %v1699_v11, 0.0 }
 0x157   : > { %v1761_v44 = vmax.f32 %v1697_v14, 0.0 }
 0x158   : > { %v1817_v45 = vpack.c.bf16 %v1763_v38, %v1762_v37 }
 0x159   : > { %v1816_v47 = vpack.c.bf16 %v1761_v44, %v1760_v41  ;;  %v3029_v49 = vpop.f32.mrb[20].mxu0 }
 0x15a   : > { %v1702_v50 = vadd.f32 %v3029_v49, %v3742_v36  ;;  %v1498_v51 = vpop.f32.mrb[21].mxu0 }
 0x15b   : > { %v1700_v52 = vadd.f32 %v3742_v36, %v1498_v51  ;;  %v3030_v53 = vpop.f32.mrb[22].mxu0  ;;  %3103 = vmatprep.mubr.bf16.mxu1 %v1816_v47 }
 0x15c   : > { %v1703_v54 = vadd.f32 %v3030_v53, %v3742_v36  ;;  %v1501_v55 = vpop.f32.mrb[23].mxu0  ;;  %3104 = vmatmul.mubr.bf16.gmra.mrb[48].mxu1 %v1817_v45  ;;  %v1766_v57 = vmax.f32 %v1702_v50, 0.0 }
 0x15d   : > { %v1701_v56 = vadd.f32 %v3742_v36, %v1501_v55  ;;  %v1764_v60 = vmax.f32 %v1700_v52, 0.0 }
 0x15e   : > { %v1767_v59 = vmax.f32 %v1703_v54, 0.0 }
 0x15f   : > { %v1765_v62 = vmax.f32 %v1701_v56, 0.0 }
 0x160   : > { %v1819_v63 = vpack.c.bf16 %v1767_v59, %v1766_v57 }
 0x161   : > { %v1818_v1 = vpack.c.bf16 %v1765_v62, %v1764_v60  ;;  %v3033_v3 = vpop.f32.mrb[24].mxu0 }
 0x162   : > { %v1706_v4 = vadd.f32 %v3033_v3, %v3742_v36  ;;  %v1514_v5 = vpop.f32.mrb[25].mxu0 }
 0x163   : > { %v1704_v6 = vadd.f32 %v3742_v36, %v1514_v5  ;;  %v3034_v7 = vpop.f32.mrb[26].mxu0  ;;  %3107 = vmatprep.mubr.bf16.mxu1 %v1818_v1 }
 0x164   : > { %v1707_v8 = vadd.f32 %v3034_v7, %v3742_v36  ;;  %v1517_v9 = vpop.f32.mrb[27].mxu0  ;;  %3108 = vmatmul.mubr.bf16.gmra.mrb[52].mxu1 %v1819_v63  ;;  %v1770_v11 = vmax.f32 %v1706_v4, 0.0 }
 0x165   : > { %v1705_v10 = vadd.f32 %v3742_v36, %v1517_v9  ;;  %v1768_v14 = vmax.f32 %v1704_v6, 0.0 }
 0x166   : > { %v1771_v13 = vmax.f32 %v1707_v8, 0.0 }
 0x167   : > { %v1769_v37 = vmax.f32 %v1705_v10, 0.0 }
 0x168   : > { %v1821_v38 = vpack.c.bf16 %v1771_v13, %v1770_v11 }
 0x169   : > { %v1820_v41 = vpack.c.bf16 %v1769_v37, %v1768_v14  ;;  %v3037_v44 = vpop.f32.mrb[28].mxu0 }
 0x16a   : > { %v1710_v45 = vadd.f32 %v3037_v44, %v3742_v36  ;;  %v1530_v47 = vpop.f32.mrb[29].mxu0 }
 0x16b   : > { %v1708_v49 = vadd.f32 %v3742_v36, %v1530_v47  ;;  %v3038_v50 = vpop.f32.mrb[30].mxu0  ;;  %3111 = vmatprep.mubr.bf16.mxu1 %v1820_v41 }
 0x16c   : > { %v1711_v51 = vadd.f32 %v3038_v50, %v3742_v36  ;;  %v1533_v52 = vpop.f32.mrb[31].mxu0  ;;  %3112 = vmatmul.mubr.bf16.gmra.mrb[56].mxu1 %v1821_v38  ;;  %v1774_v54 = vmax.f32 %v1710_v45, 0.0 }
 0x16d   : > { %v1709_v53 = vadd.f32 %v3742_v36, %v1533_v52  ;;  %v1772_v56 = vmax.f32 %v1708_v49, 0.0 }
 0x16e   : > { %v1775_v55 = vmax.f32 %v1711_v51, 0.0 }
 0x16f   : > { %v1773_v57 = vmax.f32 %v1709_v53, 0.0 }
 0x170   : > { %v1823_v59 = vpack.c.bf16 %v1775_v55, %v1774_v54 }
 0x171   : > { %v1822_v60 = vpack.c.bf16 %v1773_v57, %v1772_v56  ;;  %v3041_v62 = vpop.f32.mrb[32].mxu0 }
 0x172   : > { %v1555_v63 = vadd.f32 %v3041_v62, %v3699_v16  ;;  %v1546_v1 = vpop.f32.mrb[33].mxu0 }
 0x173   : > { %v1547_v3 = vadd.f32 %v1546_v1, %v3701_v17  ;;  %v3042_v4 = vpop.f32.mrb[34].mxu0  ;;  %3115 = vmatprep.mubr.bf16.mxu1 %v1822_v60 }
 0x174   : > { %v1714_v5 = vadd.f32 %v3742_v36, %v1555_v63  ;;  %v1558_v6 = vadd.f32 %v3042_v4, %v3703_v18  ;;  %v1549_v7 = vpop.f32.mrb[35].mxu0  ;;  %3116 = vmatmul.mubr.bf16.gmra.mrb[60].mxu1 %v1823_v59 }
 0x175   : > { %v1712_v8 = vadd.f32 %v3742_v36, %v1547_v3  ;;  %v1550_v9 = vadd.f32 %v1549_v7, %v3705_v19 }
 0x176   : > { %v1715_v10 = vadd.f32 %v3742_v36, %v1558_v6  ;;  %v1778_v16 = vmax.f32 %v1714_v5, 0.0 }
 0x177   : > { %v1713_v11 = vadd.f32 %v3742_v36, %v1550_v9  ;;  %v1776_v14 = vmax.f32 %v1712_v8, 0.0 }
 0x178   : > { %v1779_v13 = vmax.f32 %v1715_v10, 0.0 }
 0x179   : > { %v1777_v17 = vmax.f32 %v1713_v11, 0.0  ;;  %v3045_v37 = vpop.f32.mrb[36].mxu0 }
 0x17a   : > { %v1571_v38 = vadd.f32 %v3045_v37, %v3707_v20  ;;  %v1562_v41 = vpop.f32.mrb[37].mxu0  ;;  %v1825_v44 = vpack.c.bf16 %v1779_v13, %v1778_v16 }
 0x17b   : > { %v1563_v18 = vadd.f32 %v1562_v41, %v3709_v21  ;;  %v3046_v45 = vpop.f32.mrb[38].mxu0  ;;  %v1824_v47 = vpack.c.bf16 %v1777_v17, %v1776_v14 }
 0x17c   : > { %v1718_v49 = vadd.f32 %v3742_v36, %v1571_v38  ;;  %v1574_v19 = vadd.f32 %v3046_v45, %v3711_v22  ;;  %v1565_v50 = vpop.f32.mrb[39].mxu0 }
 0x17d   : > { %v1716_v51 = vadd.f32 %v3742_v36, %v1563_v18  ;;  %v1566_v52 = vadd.f32 %v1565_v50, %v3713_v23  ;;  %3119 = vmatprep.mubr.bf16.mxu1 %v1824_v47 }
 0x17e   : > { %v1719_v53 = vadd.f32 %v3742_v36, %v1574_v19  ;;  %3120 = vmatmul.mubr.bf16.gmra.mrb[64].mxu1 %v1825_v44  ;;  %v1782_v54 = vmax.f32 %v1718_v49, 0.0 }
 0x17f   : > { %v1717_v20 = vadd.f32 %v3742_v36, %v1566_v52  ;;  %v1780_v21 = vmax.f32 %v1716_v51, 0.0 }
 0x180   : > { %v1783_v55 = vmax.f32 %v1719_v53, 0.0 }
 0x181   : > { %v1781_v56 = vmax.f32 %v1717_v20, 0.0  ;;  %v3049_v57 = vpop.f32.mrb[40].mxu0 }
 0x182   : > { %v1587_v59 = vadd.f32 %v3049_v57, %v3715_v24  ;;  %v1578_v60 = vpop.f32.mrb[41].mxu0  ;;  %v1827_v22 = vpack.c.bf16 %v1783_v55, %v1782_v54 }
 0x183   : > { %v1579_v62 = vadd.f32 %v1578_v60, %v3717_v25  ;;  %v3050_v63 = vpop.f32.mrb[42].mxu0  ;;  %v1826_v1 = vpack.c.bf16 %v1781_v56, %v1780_v21 }
 0x184   : > { %v1722_v23 = vadd.f32 %v3742_v36, %v1587_v59  ;;  %v1590_v3 = vadd.f32 %v3050_v63, %v3719_v26  ;;  %v1581_v4 = vpop.f32.mrb[43].mxu0 }
 0x185   : > { %v1720_v5 = vadd.f32 %v3742_v36, %v1579_v62  ;;  %v1582_v6 = vadd.f32 %v1581_v4, %v3721_v27  ;;  %3123 = vmatprep.mubr.bf16.mxu1 %v1826_v1 }
 0x186   : > { %v1723_v7 = vadd.f32 %v3742_v36, %v1590_v3  ;;  %3124 = vmatmul.mubr.bf16.gmra.mrb[68].mxu1 %v1827_v22  ;;  %v1786_v8 = vmax.f32 %v1722_v23, 0.0 }
 0x187   : > { %v1721_v24 = vadd.f32 %v3742_v36, %v1582_v6  ;;  %v1784_v25 = vmax.f32 %v1720_v5, 0.0 }
 0x188   : > { %v1787_v9 = vmax.f32 %v1723_v7, 0.0 }
 0x189   : > { %v1785_v10 = vmax.f32 %v1721_v24, 0.0  ;;  %v3053_v11 = vpop.f32.mrb[44].mxu0 }
 0x18a   : > { %v1603_v16 = vadd.f32 %v3053_v11, %v3723_v28  ;;  %v1594_v13 = vpop.f32.mrb[45].mxu0  ;;  %v1829_v26 = vpack.c.bf16 %v1787_v9, %v1786_v8 }
 0x18b   : > { %v1595_v14 = vadd.f32 %v1594_v13, %v3725_v29  ;;  %v3054_v17 = vpop.f32.mrb[46].mxu0  ;;  %v1828_v37 = vpack.c.bf16 %v1785_v10, %v1784_v25 }
 0x18c   : > { %v1726_v27 = vadd.f32 %v3742_v36, %v1603_v16  ;;  %v1606_v38 = vadd.f32 %v3054_v17, %v3727_v30  ;;  %v1597_v41 = vpop.f32.mrb[47].mxu0 }
 0x18d   : > { %v1724_v44 = vadd.f32 %v3742_v36, %v1595_v14  ;;  %v1598_v18 = vadd.f32 %v1597_v41, %v3729_v31  ;;  %3127 = vmatprep.mubr.bf16.mxu1 %v1828_v37 }
 0x18e   : > { %v1727_v45 = vadd.f32 %v3742_v36, %v1606_v38  ;;  %3128 = vmatmul.mubr.bf16.gmra.mrb[72].mxu1 %v1829_v26  ;;  %v1790_v47 = vmax.f32 %v1726_v27, 0.0 }
 0x18f   : > { %v1725_v28 = vadd.f32 %v3742_v36, %v1598_v18  ;;  %v1788_v29 = vmax.f32 %v1724_v44, 0.0 }
 0x190   : > { %v1791_v49 = vmax.f32 %v1727_v45, 0.0 }
 0x191   : > { %v1789_v19 = vmax.f32 %v1725_v28, 0.0  ;;  %v3057_v50 = vpop.f32.mrb[48].mxu0 }
 0x192   : > { %v1619_v51 = vadd.f32 %v3057_v50, %v3731_v32  ;;  %v1610_v52 = vpop.f32.mrb[49].mxu0  ;;  %v1831_v30 = vpack.c.bf16 %v1791_v49, %v1790_v47 }
 0x193   : > { %v1611_v53 = vadd.f32 %v1610_v52, %v3733_v33  ;;  %v3058_v20 = vpop.f32.mrb[50].mxu0  ;;  %v1830_v54 = vpack.c.bf16 %v1789_v19, %v1788_v29 }
 0x194   : > { %v1730_v31 = vadd.f32 %v3742_v36, %v1619_v51  ;;  %v1622_v55 = vadd.f32 %v3058_v20, %v3735_v34  ;;  %v1613_v21 = vpop.f32.mrb[51].mxu0 }
 0x195   : > { %v1728_v56 = vadd.f32 %v3742_v36, %v1611_v53  ;;  %v1614_v57 = vadd.f32 %v1613_v21, %v3737_v35  ;;  %3131 = vmatprep.mubr.bf16.mxu1 %v1830_v54 }
 0x196   : > { %v1731_v59 = vadd.f32 %v3742_v36, %v1622_v55  ;;  %3132 = vmatmul.mubr.bf16.gmra.mrb[76].mxu1 %v1831_v30  ;;  %v1794_v60 = vmax.f32 %v1730_v31, 0.0 }
 0x197   : > { %v1729_v32 = vadd.f32 %v3742_v36, %v1614_v57  ;;  %v1792_v33 = vmax.f32 %v1728_v56, 0.0 }
 0x198   : > { %v1795_v22 = vmax.f32 %v1731_v59, 0.0 }
 0x199   : > { %v1793_v62 = vmax.f32 %v1729_v32, 0.0  ;;  %v3061_v63 = vpop.f32.mrb[52].mxu0 }
 0x19a   : > { %v1635_v1 = vadd.f32 %v3061_v63, %v3745_v40  ;;  %v1626_v23 = vpop.f32.mrb[53].mxu0  ;;  %v1833_v34 = vpack.c.bf16 %v1795_v22, %v1794_v60  ;;  %v2264_v60 = vld [vmem:[%s3871_s27] sm:$0xff] }
 0x19b   : > { %v1627_v3 = vadd.f32 %v1626_v23, %v3748_v43  ;;  %v3062_v4 = vpop.f32.mrb[54].mxu0  ;;  %v1832_v5 = vpack.c.bf16 %v1793_v62, %v1792_v33  ;;  %v2266_v62 = vld [vmem:[%s3871_s27 + $0x10] sm:$0xff]  ;;  %v2265_v23 = vld [vmem:[%s3871_s27 + $0x8] sm:$0xff] }
 0x19c   : > { %v1734_v35 = vadd.f32 %v3742_v36, %v1635_v1  ;;  %v1638_v6 = vadd.f32 %v3062_v4, %v3751_v46  ;;  %v1629_v7 = vpop.f32.mrb[55].mxu0  ;;  %v2267_v4 = vld [vmem:[%s3871_s27 + $0x18] sm:$0xff] }
 0x19d   : > { %v1732_v24 = vadd.f32 %v3742_v36, %v1627_v3  ;;  %v1630_v8 = vadd.f32 %v1629_v7, %v3754_v48  ;;  %3135 = vmatprep.mubr.bf16.mxu1 %v1832_v5 }
 0x19e   : > { %v1735_v9 = vadd.f32 %v3742_v36, %v1638_v6  ;;  %3136 = vmatmul.mubr.bf16.gmra.mrb[80].mxu1 %v1833_v34  ;;  %v1798_v25 = vmax.f32 %v1734_v35, 0.0 }
 0x19f   : > { %v1733_v40 = vadd.f32 %v3742_v36, %v1630_v8  ;;  %v1796_v43 = vmax.f32 %v1732_v24, 0.0 }
 0x1a0   : > { %v1799_v10 = vmax.f32 %v1735_v9, 0.0 }
 0x1a1   : > { %v1797_v11 = vmax.f32 %v1733_v40, 0.0  ;;  %v3065_v16 = vpop.f32.mrb[56].mxu0 }
 0x1a2   : > { %v1651_v13 = vadd.f32 %v3065_v16, %v3757_v58  ;;  %v1642_v26 = vpop.f32.mrb[57].mxu0  ;;  %v1835_v46 = vpack.c.bf16 %v1799_v10, %v1798_v25  ;;  %v2268_v25 = vld [vmem:[%s3871_s27 + $0x20] sm:$0xff] }
 0x1a3   : > { %v1643_v14 = vadd.f32 %v1642_v26, %v3760_v61  ;;  %v3066_v17 = vpop.f32.mrb[58].mxu0  ;;  %v1834_v37 = vpack.c.bf16 %v1797_v11, %v1796_v43 }
 0x1a4   : > { %v1738_v48 = vadd.f32 %v3742_v36, %v1651_v13  ;;  %v1654_v27 = vadd.f32 %v3066_v17, %v3763_v0  ;;  %v1645_v38 = vpop.f32.mrb[59].mxu0  ;;  %v2270_v13 = vld [vmem:[%s3871_s27 + $0x30] sm:$0xff] }
 0x1a5   : > { %v1736_v41 = vadd.f32 %v3742_v36, %v1643_v14  ;;  %v1646_v44 = vadd.f32 %v1645_v38, %v3766_v2  ;;  %3139 = vmatprep.mubr.bf16.mxu1 %v1834_v37  ;;  %v2269_v14 = vld [vmem:[%s3871_s27 + $0x28] sm:$0xff]  ;;  %v2271_v38 = vld [vmem:[%s3871_s27 + $0x38] sm:$0xff] }
 0x1a6   : > { %v1739_v18 = vadd.f32 %v3742_v36, %v1654_v27  ;;  %3140 = vmatmul.mubr.bf16.gmra.mrb[84].mxu1 %v1835_v46  ;;  %v1802_v45 = vmax.f32 %v1738_v48, 0.0 }
 0x1a7   : > { %v1737_v58 = vadd.f32 %v3742_v36, %v1646_v44  ;;  %v1800_v61 = vmax.f32 %v1736_v41, 0.0 }
 0x1a8   : > { %v1803_v28 = vmax.f32 %v1739_v18, 0.0 }
 0x1a9   : > { %v1801_v47 = vmax.f32 %v1737_v58, 0.0  ;;  %v3069_v49 = vpop.f32.mrb[60].mxu0 }
 0x1aa   : > { %v1667_v29 = vadd.f32 %v3069_v49, %v3769_v12  ;;  %v1658_v19 = vpop.f32.mrb[61].mxu0  ;;  %v1837_v0 = vpack.c.bf16 %v1803_v28, %v1802_v45 }
 0x1ab   : > { %v1659_v50 = vadd.f32 %v1658_v19, %v3772_v15  ;;  %v3070_v51 = vpop.f32.mrb[62].mxu0  ;;  %v1836_v52 = vpack.c.bf16 %v1801_v47, %v1800_v61  ;;  %v2272_v19 = vld [vmem:[%s3871_s27 + $0x40] sm:$0xff] }
 0x1ac   : > { %v1742_v2 = vadd.f32 %v3742_v36, %v1667_v29  ;;  %v1670_v30 = vadd.f32 %v3070_v51, %v3775_v39  ;;  %v1661_v53 = vpop.f32.mrb[63].mxu0 }
 0x1ad   : > { %v1740_v20 = vadd.f32 %v3742_v36, %v1659_v50  ;;  %v1662_v54 = vadd.f32 %v1661_v53, %v3778_v42  ;;  %3143 = vmatprep.mubr.bf16.mxu1 %v1836_v52 }
 0x1ae   : > { %v1743_v12 = vadd.f32 %v3742_v36, %v1670_v30  ;;  %3144 = vmatmul.mubr.bf16.gmra.mrb[88].mxu1 %v1837_v0  ;;  %v1806_v31 = vmax.f32 %v1742_v2, 0.0  ;;  %v2274_v2 = vld [vmem:[%s3871_s27 + $0x50] sm:$0xff] }
 0x1af   : > { %v1741_v15 = vadd.f32 %v3742_v36, %v1662_v54  ;;  %v1804_v21 = vmax.f32 %v1740_v20, 0.0  ;;  %v3876_v36 = vld [vmem:[%s4140_s6] ss:$0 sm:$0xff]  ;;  %v2273_v20 = vld [vmem:[%s3871_s27 + $0x48] sm:$0xff] }
 0x1b0   : > { %v1807_v55 = vmax.f32 %v1743_v12, 0.0 }
 0x1b1   : > { %v1805_v56 = vmax.f32 %v1741_v15, 0.0 }
 0x1b2   : > { %v1839_v57 = vpack.c.bf16 %v1807_v55, %v1806_v31  ;;  %v2275_v55 = vld [vmem:[%s3871_s27 + $0x58] sm:$0xff] }
 0x1b3   : > { %v1838_v39 = vpack.c.bf16 %v1805_v56, %v1804_v21 }
 0x1b5   : > { %3147 = vmatprep.mubr.bf16.mxu1 %v1838_v39 }
 0x1b6   : > { %3148 = vmatmul.mubr.bf16.gmra.mrb[92].mxu1 %v1839_v57 }
 0x20f   : > { %v3089_v42 = vpop.f32.mrb[32].mxu1 }
 0x210   : > { %v1954_v59 = vadd.f32 %v3089_v42, %v3876_v36  ;;  %v1945_v32 = vpop.f32.mrb[33].mxu1 }
 0x211   : > { %v1946_v22 = vadd.f32 %v3876_v36, %v1945_v32  ;;  %v3090_v33 = vpop.f32.mrb[34].mxu1 }
 0x212   : > { %2202 = vst [vmem:[%s3881_s23 + $0x10] sm:$0xff] %v1954_v59  ;;  %v1957_v63 = vadd.f32 %v3090_v33, %v3876_v36  ;;  %v1948_v1 = vpop.f32.mrb[35].mxu1  ;;  %v2330_v5 = vsub.f32 %v1954_v59, %v2266_v62  ;;  %v2276_v62 = vld [vmem:[%s3871_s27 + $0x60] sm:$0xff] }
 0x213   : > { %2200 = vst [vmem:[%s3881_s23] sm:$0xff] %v1946_v22  ;;  %v2328_v34 = vsub.f32 %v1946_v22, %v2264_v60  ;;  %v1949_v3 = vadd.f32 %v3876_v36, %v1948_v1 }
 0x214   : > { %2203 = vst [vmem:[%s3881_s23 + $0x18] sm:$0xff] %v1957_v63  ;;  %v2331_v7 = vsub.f32 %v1957_v63, %v2267_v4  ;;  %v2394_v10 = vmul.f32 %v2330_v5, %v2330_v5 }
 0x215   : > { %2201 = vst [vmem:[%s3881_s23 + $0x8] sm:$0xff] %v1949_v3  ;;  %v2329_v35 = vsub.f32 %v1949_v3, %v2265_v23  ;;  %v2392_v6 = vmul.f32 %v2328_v34, %v2328_v34  ;;  %v2278_v3 = vld [vmem:[%s3871_s27 + $0x70] sm:$0xff] }
 0x216   : > { %v2395_v17 = vmul.f32 %v2331_v7, %v2331_v7 }
 0x217   : > { %v2393_v24 = vmul.f32 %v2329_v35, %v2329_v35  ;;  %v3093_v8 = vpop.f32.mrb[36].mxu1  ;;  %v2277_v35 = vld [vmem:[%s3871_s27 + $0x68] sm:$0xff] }
 0x218   : > { %v1970_v9 = vadd.f32 %v3093_v8, %v3876_v36  ;;  %v1961_v40 = vpop.f32.mrb[37].mxu1 }
 0x219   : > { %v2456_v43 = vadd.f32 %v2393_v24, %v2392_v6  ;;  %v1962_v11 = vadd.f32 %v3876_v36, %v1961_v40  ;;  %v3094_v16 = vpop.f32.mrb[38].mxu1 }
 0x21a   : > { %2206 = vst [vmem:[%s3881_s23 + $0x30] sm:$0xff] %v1970_v9  ;;  %v1973_v26 = vadd.f32 %v3094_v16, %v3876_v36  ;;  %v1964_v46 = vpop.f32.mrb[39].mxu1  ;;  %v2334_v41 = vsub.f32 %v1970_v9, %v2270_v13  ;;  %v2279_v9 = vld [vmem:[%s3871_s27 + $0x78] sm:$0xff] }
 0x21b   : > { %v2457_v37 = vadd.f32 %v2456_v43, %v2394_v10  ;;  %2204 = vst [vmem:[%s3881_s23 + $0x20] sm:$0xff] %v1962_v11  ;;  %v2332_v48 = vsub.f32 %v1962_v11, %v2268_v25  ;;  %v1965_v27 = vadd.f32 %v3876_v36, %v1964_v46 }
 0x21c   : > { %2207 = vst [vmem:[%s3881_s23 + $0x38] sm:$0xff] %v1973_v26  ;;  %v2335_v28 = vsub.f32 %v1973_v26, %v2271_v38  ;;  %v2398_v0 = vmul.f32 %v2334_v41, %v2334_v41  ;;  %v2282_v41 = vld [vmem:[%s3871_s27 + $0x90] sm:$0xff] }
 0x21d   : > { %v2396_v44 = vmul.f32 %v2332_v48, %v2332_v48  ;;  %v2458_v18 = vadd.f32 %v2457_v37, %v2395_v17  ;;  %2205 = vst [vmem:[%s3881_s23 + $0x28] sm:$0xff] %v1965_v27  ;;  %v2333_v58 = vsub.f32 %v1965_v27, %v2269_v14  ;;  %v2280_v17 = vld [vmem:[%s3871_s27 + $0x80] sm:$0xff] }
 0x21e   : > { %v2399_v54 = vmul.f32 %v2335_v28, %v2335_v28 }
 0x21f   : > { %v2459_v45 = vadd.f32 %v2458_v18, %v2396_v44  ;;  %v2397_v61 = vmul.f32 %v2333_v58, %v2333_v58  ;;  %v3097_v47 = vpop.f32.mrb[40].mxu1  ;;  %v2281_v58 = vld [vmem:[%s3871_s27 + $0x88] sm:$0xff] }
 0x220   : > { %v1986_v49 = vadd.f32 %v3097_v47, %v3876_v36  ;;  %v1977_v29 = vpop.f32.mrb[41].mxu1 }
 0x221   : > { %v2460_v50 = vadd.f32 %v2459_v45, %v2397_v61  ;;  %v1978_v51 = vadd.f32 %v3876_v36, %v1977_v29  ;;  %v3098_v52 = vpop.f32.mrb[42].mxu1 }
 0x222   : > { %2210 = vst [vmem:[%s3881_s23 + $0x50] sm:$0xff] %v1986_v49  ;;  %v1989_v30 = vadd.f32 %v3098_v52, %v3876_v36  ;;  %v1980_v53 = vpop.f32.mrb[43].mxu1  ;;  %v2338_v21 = vsub.f32 %v1986_v49, %v2274_v2  ;;  %v2283_v49 = vld [vmem:[%s3871_s27 + $0x98] sm:$0xff] }
 0x223   : > { %v2461_v12 = vadd.f32 %v2460_v50, %v2398_v0  ;;  %2208 = vst [vmem:[%s3881_s23 + $0x40] sm:$0xff] %v1978_v51  ;;  %v2336_v15 = vsub.f32 %v1978_v51, %v2272_v19  ;;  %v1981_v31 = vadd.f32 %v3876_v36, %v1980_v53 }
 0x224   : > { %2211 = vst [vmem:[%s3881_s23 + $0x58] sm:$0xff] %v1989_v30  ;;  %v2339_v59 = vsub.f32 %v1989_v30, %v2275_v55  ;;  %v2402_v63 = vmul.f32 %v2338_v21, %v2338_v21  ;;  %v2286_v21 = vld [vmem:[%s3871_s27 + $0xb0] sm:$0xff] }
 0x225   : > { %v2400_v56 = vmul.f32 %v2336_v15, %v2336_v15  ;;  %v2462_v57 = vadd.f32 %v2461_v12, %v2399_v54  ;;  %2209 = vst [vmem:[%s3881_s23 + $0x48] sm:$0xff] %v1981_v31  ;;  %v2337_v39 = vsub.f32 %v1981_v31, %v2273_v20  ;;  %v2284_v54 = vld [vmem:[%s3871_s27 + $0xa0] sm:$0xff] }
 0x226   : > { %v2403_v6 = vmul.f32 %v2339_v59, %v2339_v59 }
 0x227   : > { %v2463_v42 = vadd.f32 %v2462_v57, %v2400_v56  ;;  %v2401_v32 = vmul.f32 %v2337_v39, %v2337_v39  ;;  %v3101_v60 = vpop.f32.mrb[44].mxu1  ;;  %v2285_v39 = vld [vmem:[%s3871_s27 + $0xa8] sm:$0xff] }
 0x228   : > { %v2002_v22 = vadd.f32 %v3101_v60, %v3876_v36  ;;  %v1993_v33 = vpop.f32.mrb[45].mxu1 }
 0x229   : > { %v2464_v1 = vadd.f32 %v2463_v42, %v2401_v32  ;;  %v1994_v23 = vadd.f32 %v3876_v36, %v1993_v33  ;;  %v3102_v34 = vpop.f32.mrb[46].mxu1 }
 0x22a   : > { %2214 = vst [vmem:[%s3881_s23 + $0x70] sm:$0xff] %v2002_v22  ;;  %v2005_v4 = vadd.f32 %v3102_v34, %v3876_v36  ;;  %v1996_v5 = vpop.f32.mrb[47].mxu1  ;;  %v2342_v40 = vsub.f32 %v2002_v22, %v2278_v3  ;;  %v2287_v22 = vld [vmem:[%s3871_s27 + $0xb8] sm:$0xff] }
 0x22b   : > { %v2465_v7 = vadd.f32 %v2464_v1, %v2402_v63  ;;  %2212 = vst [vmem:[%s3881_s23 + $0x60] sm:$0xff] %v1994_v23  ;;  %v2340_v24 = vsub.f32 %v1994_v23, %v2276_v62  ;;  %v1997_v8 = vadd.f32 %v3876_v36, %v1996_v5 }
 0x22c   : > { %2215 = vst [vmem:[%s3881_s23 + $0x78] sm:$0xff] %v2005_v4  ;;  %v2343_v16 = vsub.f32 %v2005_v4, %v2279_v9  ;;  %v2406_v37 = vmul.f32 %v2342_v40, %v2342_v40  ;;  %v2290_v40 = vld [vmem:[%s3871_s27 + $0xd0] sm:$0xff] }
 0x22d   : > { %v2404_v25 = vmul.f32 %v2340_v24, %v2340_v24  ;;  %v2466_v10 = vadd.f32 %v2465_v7, %v2403_v6  ;;  %2213 = vst [vmem:[%s3881_s23 + $0x68] sm:$0xff] %v1997_v8  ;;  %v2341_v43 = vsub.f32 %v1997_v8, %v2277_v35  ;;  %v2288_v6 = vld [vmem:[%s3871_s27 + $0xc0] sm:$0xff] }
 0x22e   : > { %v2407_v45 = vmul.f32 %v2343_v16, %v2343_v16 }
 0x22f   : > { %v2467_v11 = vadd.f32 %v2466_v10, %v2404_v25  ;;  %v2405_v13 = vmul.f32 %v2341_v43, %v2341_v43  ;;  %v3105_v26 = vpop.f32.mrb[48].mxu1  ;;  %v2289_v43 = vld [vmem:[%s3871_s27 + $0xc8] sm:$0xff] }
 0x230   : > { %v2018_v46 = vadd.f32 %v3105_v26, %v3876_v36  ;;  %v2009_v14 = vpop.f32.mrb[49].mxu1 }
 0x231   : > { %v2468_v48 = vadd.f32 %v2467_v11, %v2405_v13  ;;  %v2010_v27 = vadd.f32 %v3876_v36, %v2009_v14  ;;  %v3106_v38 = vpop.f32.mrb[50].mxu1 }
 0x232   : > { %2218 = vst [vmem:[%s3881_s23 + $0x90] sm:$0xff] %v2018_v46  ;;  %v2021_v44 = vadd.f32 %v3106_v38, %v3876_v36  ;;  %v2012_v18 = vpop.f32.mrb[51].mxu1  ;;  %v2346_v29 = vsub.f32 %v2018_v46, %v2282_v41  ;;  %v2291_v46 = vld [vmem:[%s3871_s27 + $0xd8] sm:$0xff] }
 0x233   : > { %v2469_v28 = vadd.f32 %v2468_v48, %v2406_v37  ;;  %2216 = vst [vmem:[%s3881_s23 + $0x80] sm:$0xff] %v2010_v27  ;;  %v2344_v61 = vsub.f32 %v2010_v27, %v2280_v17  ;;  %v2013_v47 = vadd.f32 %v3876_v36, %v2012_v18 }
 0x234   : > { %2219 = vst [vmem:[%s3881_s23 + $0x98] sm:$0xff] %v2021_v44  ;;  %v2347_v52 = vsub.f32 %v2021_v44, %v2283_v49  ;;  %v2410_v12 = vmul.f32 %v2346_v29, %v2346_v29  ;;  %v2294_v29 = vld [vmem:[%s3871_s27 + $0xf0] sm:$0xff] }
 0x235   : > { %v2408_v19 = vmul.f32 %v2344_v61, %v2344_v61  ;;  %v2470_v0 = vadd.f32 %v2469_v28, %v2407_v45  ;;  %2217 = vst [vmem:[%s3881_s23 + $0x88] sm:$0xff] %v2013_v47  ;;  %v2345_v50 = vsub.f32 %v2013_v47, %v2281_v58  ;;  %v2292_v45 = vld [vmem:[%s3871_s27 + $0xe0] sm:$0xff] }
 0x236   : > { %v2411_v42 = vmul.f32 %v2347_v52, %v2347_v52 }
 0x237   : > { %v2471_v51 = vadd.f32 %v2470_v0, %v2408_v19  ;;  %v2409_v2 = vmul.f32 %v2345_v50, %v2345_v50  ;;  %v3109_v30 = vpop.f32.mrb[52].mxu1  ;;  %v2293_v50 = vld [vmem:[%s3871_s27 + $0xe8] sm:$0xff] }
 0x238   : > { %v2034_v53 = vadd.f32 %v3109_v30, %v3876_v36  ;;  %v2025_v20 = vpop.f32.mrb[53].mxu1 }
 0x239   : > { %v2472_v15 = vadd.f32 %v2471_v51, %v2409_v2  ;;  %v2026_v31 = vadd.f32 %v3876_v36, %v2025_v20  ;;  %v3110_v55 = vpop.f32.mrb[54].mxu1 }
 0x23a   : > { %2222 = vst [vmem:[%s3881_s23 + $0xb0] sm:$0xff] %v2034_v53  ;;  %v2037_v56 = vadd.f32 %v3110_v55, %v3876_v36  ;;  %v2028_v57 = vpop.f32.mrb[55].mxu1  ;;  %v2350_v33 = vsub.f32 %v2034_v53, %v2286_v21  ;;  %v2295_v53 = vld [vmem:[%s3871_s27 + $0xf8] sm:$0xff] }
 0x23b   : > { %v2473_v59 = vadd.f32 %v2472_v15, %v2410_v12  ;;  %2220 = vst [vmem:[%s3881_s23 + $0xa0] sm:$0xff] %v2026_v31  ;;  %v2348_v32 = vsub.f32 %v2026_v31, %v2284_v54  ;;  %v2029_v60 = vadd.f32 %v3876_v36, %v2028_v57 }
 0x23c   : > { %2223 = vst [vmem:[%s3881_s23 + $0xb8] sm:$0xff] %v2037_v56  ;;  %v2351_v34 = vsub.f32 %v2037_v56, %v2287_v22  ;;  %v2414_v7 = vmul.f32 %v2350_v33, %v2350_v33 }
 0x23d   : > { %v2412_v62 = vmul.f32 %v2348_v32, %v2348_v32  ;;  %v2474_v63 = vadd.f32 %v2473_v59, %v2411_v42  ;;  %2221 = vst [vmem:[%s3881_s23 + $0xa8] sm:$0xff] %v2029_v60  ;;  %v2349_v1 = vsub.f32 %v2029_v60, %v2285_v39  ;;  %v2296_v32 = vld [vmem:[%s3871_s27 + $0x100] sm:$0xff] }
 0x23e   : > { %v2415_v11 = vmul.f32 %v2351_v34, %v2351_v34  ;;  %v2297_v34 = vld [vmem:[%s3871_s27 + $0x108] sm:$0xff] }
 0x23f   : > { %v2475_v23 = vadd.f32 %v2474_v63, %v2412_v62  ;;  %v2413_v3 = vmul.f32 %v2349_v1, %v2349_v1  ;;  %v3113_v4 = vpop.f32.mrb[56].mxu1  ;;  %v2298_v63 = vld [vmem:[%s3871_s27 + $0x110] sm:$0xff] }
 0x240   : > { %v2050_v5 = vadd.f32 %v3113_v4, %v3876_v36  ;;  %v2041_v35 = vpop.f32.mrb[57].mxu1 }
 0x241   : > { %v2476_v24 = vadd.f32 %v2475_v23, %v2413_v3  ;;  %v2042_v8 = vadd.f32 %v3876_v36, %v2041_v35  ;;  %v3114_v9 = vpop.f32.mrb[58].mxu1  ;;  %v2299_v35 = vld [vmem:[%s3871_s27 + $0x118] sm:$0xff] }
 0x242   : > { %2226 = vst [vmem:[%s3881_s23 + $0xd0] sm:$0xff] %v2050_v5  ;;  %v2053_v25 = vadd.f32 %v3114_v9, %v3876_v36  ;;  %v2044_v10 = vpop.f32.mrb[59].mxu1  ;;  %v2354_v14 = vsub.f32 %v2050_v5, %v2290_v40 }
 0x243   : > { %v2477_v16 = vadd.f32 %v2476_v24, %v2414_v7  ;;  %2224 = vst [vmem:[%s3881_s23 + $0xc0] sm:$0xff] %v2042_v8  ;;  %v2352_v13 = vsub.f32 %v2042_v8, %v2288_v6  ;;  %v2045_v26 = vadd.f32 %v3876_v36, %v2044_v10 }
 0x244   : > { %2227 = vst [vmem:[%s3881_s23 + $0xd8] sm:$0xff] %v2053_v25  ;;  %v2355_v38 = vsub.f32 %v2053_v25, %v2291_v46  ;;  %v2418_v28 = vmul.f32 %v2354_v14, %v2354_v14  ;;  %v2302_v14 = vld [vmem:[%s3871_s27 + $0x130] sm:$0xff] }
 0x245   : > { %v2416_v17 = vmul.f32 %v2352_v13, %v2352_v13  ;;  %v2478_v37 = vadd.f32 %v2477_v16, %v2415_v11  ;;  %2225 = vst [vmem:[%s3881_s23 + $0xc8] sm:$0xff] %v2045_v26  ;;  %v2353_v48 = vsub.f32 %v2045_v26, %v2289_v43  ;;  %v2300_v11 = vld [vmem:[%s3871_s27 + $0x120] sm:$0xff] }
 0x246   : > { %v2419_v51 = vmul.f32 %v2355_v38, %v2355_v38 }
 0x247   : > { %v2479_v27 = vadd.f32 %v2478_v37, %v2416_v17  ;;  %v2417_v41 = vmul.f32 %v2353_v48, %v2353_v48  ;;  %v3117_v44 = vpop.f32.mrb[60].mxu1  ;;  %v2301_v48 = vld [vmem:[%s3871_s27 + $0x128] sm:$0xff] }
 0x248   : > { %v2066_v18 = vadd.f32 %v3117_v44, %v3876_v36  ;;  %v2057_v58 = vpop.f32.mrb[61].mxu1 }
 0x249   : > { %v2480_v61 = vadd.f32 %v2479_v27, %v2417_v41  ;;  %v2058_v47 = vadd.f32 %v3876_v36, %v2057_v58  ;;  %v3118_v49 = vpop.f32.mrb[62].mxu1 }
 0x24a   : > { %2230 = vst [vmem:[%s3881_s23 + $0xf0] sm:$0xff] %v2066_v18  ;;  %v2069_v19 = vadd.f32 %v3118_v49, %v3876_v36  ;;  %v2060_v0 = vpop.f32.mrb[63].mxu1  ;;  %v2358_v20 = vsub.f32 %v2066_v18, %v2294_v29  ;;  %v2303_v18 = vld [vmem:[%s3871_s27 + $0x138] sm:$0xff] }
 0x24b   : > { %v2481_v52 = vadd.f32 %v2480_v61, %v2418_v28  ;;  %2228 = vst [vmem:[%s3881_s23 + $0xe0] sm:$0xff] %v2058_v47  ;;  %v2356_v2 = vsub.f32 %v2058_v47, %v2292_v45  ;;  %v2061_v30 = vadd.f32 %v3876_v36, %v2060_v0 }
 0x24c   : > { %2231 = vst [vmem:[%s3881_s23 + $0xf8] sm:$0xff] %v2069_v19  ;;  %v2359_v55 = vsub.f32 %v2069_v19, %v2295_v53  ;;  %v2422_v56 = vmul.f32 %v2358_v20, %v2358_v20  ;;  %v2306_v20 = vld [vmem:[%s3871_s27 + $0x150] sm:$0xff] }
 0x24d   : > { %v2420_v54 = vmul.f32 %v2356_v2, %v2356_v2  ;;  %v2482_v12 = vadd.f32 %v2481_v52, %v2419_v51  ;;  %2229 = vst [vmem:[%s3881_s23 + $0xe8] sm:$0xff] %v2061_v30  ;;  %v2357_v15 = vsub.f32 %v2061_v30, %v2293_v50  ;;  %v2304_v51 = vld [vmem:[%s3871_s27 + $0x140] sm:$0xff] }
 0x24e   : > { %v2423_v60 = vmul.f32 %v2359_v55, %v2359_v55 }
 0x24f   : > { %v2483_v31 = vadd.f32 %v2482_v12, %v2420_v54  ;;  %v2421_v21 = vmul.f32 %v2357_v15, %v2357_v15  ;;  %v2305_v15 = vld [vmem:[%s3871_s27 + $0x148] sm:$0xff] }
 0x251   : > { %v2484_v57 = vadd.f32 %v2483_v31, %v2421_v21  ;;  %v3121_v39 = vpop.f32.mrb[64].mxu1 }
 0x252   : > { %v2082_v42 = vadd.f32 %v3121_v39, %v3876_v36  ;;  %v2073_v59 = vpop.f32.mrb[65].mxu1 }
 0x253   : > { %v2485_v22 = vadd.f32 %v2484_v57, %v2422_v56  ;;  %v2074_v33 = vadd.f32 %v3876_v36, %v2073_v59  ;;  %v3122_v62 = vpop.f32.mrb[66].mxu1  ;;  %v2307_v57 = vld [vmem:[%s3871_s27 + $0x158] sm:$0xff] }
 0x254   : > { %2234 = vst [vmem:[%s3881_s23 + $0x110] sm:$0xff] %v2082_v42  ;;  %v2085_v1 = vadd.f32 %v3122_v62, %v3876_v36  ;;  %v2076_v23 = vpop.f32.mrb[67].mxu1  ;;  %v2362_v6 = vsub.f32 %v2082_v42, %v2298_v63 }
 0x255   : > { %2232 = vst [vmem:[%s3881_s23 + $0x100] sm:$0xff] %v2074_v33  ;;  %v2360_v3 = vsub.f32 %v2074_v33, %v2296_v32  ;;  %v2486_v4 = vadd.f32 %v2485_v22, %v2423_v60  ;;  %v2077_v5 = vadd.f32 %v3876_v36, %v2076_v23  ;;  %v2308_v23 = vld [vmem:[%s3871_s27 + $0x160] sm:$0xff] }
 0x256   : > { %2235 = vst [vmem:[%s3881_s23 + $0x118] sm:$0xff] %v2085_v1  ;;  %v2363_v9 = vsub.f32 %v2085_v1, %v2299_v35  ;;  %v2426_v16 = vmul.f32 %v2362_v6, %v2362_v6  ;;  %v2310_v35 = vld [vmem:[%s3871_s27 + $0x170] sm:$0xff] }
 0x257   : > { %v2424_v7 = vmul.f32 %v2360_v3, %v2360_v3  ;;  %2233 = vst [vmem:[%s3881_s23 + $0x108] sm:$0xff] %v2077_v5  ;;  %v2361_v24 = vsub.f32 %v2077_v5, %v2297_v34 }
 0x258   : > { %v2427_v27 = vmul.f32 %v2363_v9, %v2363_v9 }
 0x259   : > { %v2487_v8 = vadd.f32 %v2486_v4, %v2424_v7  ;;  %v2425_v40 = vmul.f32 %v2361_v24, %v2361_v24  ;;  %v3125_v25 = vpop.f32.mrb[68].mxu1  ;;  %v2309_v24 = vld [vmem:[%s3871_s27 + $0x168] sm:$0xff] }
 0x25a   : > { %v2098_v10 = vadd.f32 %v3125_v25, %v3876_v36  ;;  %v2089_v43 = vpop.f32.mrb[69].mxu1 }
 0x25b   : > { %v2488_v13 = vadd.f32 %v2487_v8, %v2425_v40  ;;  %v2090_v26 = vadd.f32 %v3876_v36, %v2089_v43  ;;  %v3126_v46 = vpop.f32.mrb[70].mxu1 }
 0x25c   : > { %2238 = vst [vmem:[%s3881_s23 + $0x130] sm:$0xff] %v2098_v10  ;;  %v2101_v17 = vadd.f32 %v3126_v46, %v3876_v36  ;;  %v2092_v37 = vpop.f32.mrb[71].mxu1  ;;  %v2366_v58 = vsub.f32 %v2098_v10, %v2302_v14  ;;  %v2311_v10 = vld [vmem:[%s3871_s27 + $0x178] sm:$0xff] }
 0x25d   : > { %v2489_v38 = vadd.f32 %v2488_v13, %v2426_v16  ;;  %2236 = vst [vmem:[%s3881_s23 + $0x120] sm:$0xff] %v2090_v26  ;;  %v2364_v41 = vsub.f32 %v2090_v26, %v2300_v11  ;;  %v2093_v44 = vadd.f32 %v3876_v36, %v2092_v37 }
 0x25e   : > { %2239 = vst [vmem:[%s3881_s23 + $0x138] sm:$0xff] %v2101_v17  ;;  %v2367_v49 = vsub.f32 %v2101_v17, %v2303_v18  ;;  %v2430_v52 = vmul.f32 %v2366_v58, %v2366_v58  ;;  %v2314_v58 = vld [vmem:[%s3871_s27 + $0x190] sm:$0xff] }
 0x25f   : > { %v2428_v45 = vmul.f32 %v2364_v41, %v2364_v41  ;;  %v2490_v28 = vadd.f32 %v2489_v38, %v2427_v27  ;;  %2237 = vst [vmem:[%s3881_s23 + $0x128] sm:$0xff] %v2093_v44  ;;  %v2365_v61 = vsub.f32 %v2093_v44, %v2301_v48  ;;  %v2312_v27 = vld [vmem:[%s3871_s27 + $0x180] sm:$0xff] }
 0x260   : > { %v2431_v31 = vmul.f32 %v2367_v49, %v2367_v49 }
 0x261   : > { %v2491_v47 = vadd.f32 %v2490_v28, %v2428_v45  ;;  %v2429_v29 = vmul.f32 %v2365_v61, %v2365_v61  ;;  %v3129_v19 = vpop.f32.mrb[72].mxu1  ;;  %v2313_v61 = vld [vmem:[%s3871_s27 + $0x188] sm:$0xff] }
 0x262   : > { %v2114_v0 = vadd.f32 %v3129_v19, %v3876_v36  ;;  %v2105_v50 = vpop.f32.mrb[73].mxu1 }
 0x263   : > { %v2492_v2 = vadd.f32 %v2491_v47, %v2429_v29  ;;  %v2106_v30 = vadd.f32 %v3876_v36, %v2105_v50  ;;  %v3130_v53 = vpop.f32.mrb[74].mxu1 }
 0x264   : > { %2242 = vst [vmem:[%s3881_s23 + $0x150] sm:$0xff] %v2114_v0  ;;  %v2117_v54 = vadd.f32 %v3130_v53, %v3876_v36  ;;  %v2108_v12 = vpop.f32.mrb[75].mxu1  ;;  %v2370_v39 = vsub.f32 %v2114_v0, %v2306_v20  ;;  %v2315_v0 = vld [vmem:[%s3871_s27 + $0x198] sm:$0xff] }
 0x265   : > { %v2493_v55 = vadd.f32 %v2492_v2, %v2430_v52  ;;  %2240 = vst [vmem:[%s3881_s23 + $0x140] sm:$0xff] %v2106_v30  ;;  %v2368_v21 = vsub.f32 %v2106_v30, %v2304_v51  ;;  %v2109_v56 = vadd.f32 %v3876_v36, %v2108_v12 }
 0x266   : > { %2243 = vst [vmem:[%s3881_s23 + $0x158] sm:$0xff] %v2117_v54  ;;  %v2371_v22 = vsub.f32 %v2117_v54, %v2307_v57  ;;  %v2434_v34 = vmul.f32 %v2370_v39, %v2370_v39  ;;  %v2318_v39 = vld [vmem:[%s3871_s27 + $0x1b0] sm:$0xff] }
 0x267   : > { %v2432_v42 = vmul.f32 %v2368_v21, %v2368_v21  ;;  %v2494_v59 = vadd.f32 %v2493_v55, %v2431_v31  ;;  %2241 = vst [vmem:[%s3881_s23 + $0x148] sm:$0xff] %v2109_v56  ;;  %v2369_v32 = vsub.f32 %v2109_v56, %v2305_v15  ;;  %v2316_v31 = vld [vmem:[%s3871_s27 + $0x1a0] sm:$0xff] }
 0x268   : > { %v2435_v8 = vmul.f32 %v2371_v22, %v2371_v22 }
 0x269   : > { %v2495_v60 = vadd.f32 %v2494_v59, %v2432_v42  ;;  %v2433_v33 = vmul.f32 %v2369_v32, %v2369_v32  ;;  %v3133_v62 = vpop.f32.mrb[76].mxu1  ;;  %v2317_v32 = vld [vmem:[%s3871_s27 + $0x1a8] sm:$0xff] }
 0x26a   : > { %v2130_v63 = vadd.f32 %v3133_v62, %v3876_v36  ;;  %v2121_v1 = vpop.f32.mrb[77].mxu1 }
 0x26b   : > { %v2496_v3 = vadd.f32 %v2495_v60, %v2433_v33  ;;  %v2122_v4 = vadd.f32 %v3876_v36, %v2121_v1  ;;  %v3134_v5 = vpop.f32.mrb[78].mxu1 }
 0x26c   : > { %2246 = vst [vmem:[%s3881_s23 + $0x170] sm:$0xff] %v2130_v63  ;;  %v2133_v6 = vadd.f32 %v3134_v5, %v3876_v36  ;;  %v2124_v7 = vpop.f32.mrb[79].mxu1  ;;  %v2374_v43 = vsub.f32 %v2130_v63, %v2310_v35  ;;  %v2319_v63 = vld [vmem:[%s3871_s27 + $0x1b8] sm:$0xff] }
 0x26d   : > { %v2497_v9 = vadd.f32 %v2496_v3, %v2434_v34  ;;  %2244 = vst [vmem:[%s3881_s23 + $0x160] sm:$0xff] %v2122_v4  ;;  %v2372_v40 = vsub.f32 %v2122_v4, %v2308_v23  ;;  %v2125_v25 = vadd.f32 %v3876_v36, %v2124_v7 }
 0x26e   : > { %2247 = vst [vmem:[%s3881_s23 + $0x178] sm:$0xff] %v2133_v6  ;;  %v2375_v46 = vsub.f32 %v2133_v6, %v2311_v10  ;;  %v2438_v38 = vmul.f32 %v2374_v43, %v2374_v43  ;;  %v2322_v43 = vld [vmem:[%s3871_s27 + $0x1d0] sm:$0xff] }
 0x26f   : > { %v2436_v11 = vmul.f32 %v2372_v40, %v2372_v40  ;;  %v2498_v16 = vadd.f32 %v2497_v9, %v2435_v8  ;;  %2245 = vst [vmem:[%s3881_s23 + $0x168] sm:$0xff] %v2125_v25  ;;  %v2373_v13 = vsub.f32 %v2125_v25, %v2309_v24  ;;  %v2320_v8 = vld [vmem:[%s3871_s27 + $0x1c0] sm:$0xff] }
 0x270   : > { %v2439_v47 = vmul.f32 %v2375_v46, %v2375_v46 }
 0x271   : > { %v2499_v26 = vadd.f32 %v2498_v16, %v2436_v11  ;;  %v2437_v14 = vmul.f32 %v2373_v13, %v2373_v13  ;;  %v3137_v17 = vpop.f32.mrb[80].mxu1  ;;  %v2321_v13 = vld [vmem:[%s3871_s27 + $0x1c8] sm:$0xff] }
 0x272   : > { %v2146_v37 = vadd.f32 %v3137_v17, %v3876_v36  ;;  %v2137_v48 = vpop.f32.mrb[81].mxu1 }
 0x273   : > { %v2500_v41 = vadd.f32 %v2499_v26, %v2437_v14  ;;  %v2138_v44 = vadd.f32 %v3876_v36, %v2137_v48  ;;  %v3138_v18 = vpop.f32.mrb[82].mxu1 }
 0x274   : > { %2250 = vst [vmem:[%s3881_s23 + $0x190] sm:$0xff] %v2146_v37  ;;  %v2149_v45 = vadd.f32 %v3138_v18, %v3876_v36  ;;  %v2140_v28 = vpop.f32.mrb[83].mxu1  ;;  %v2378_v50 = vsub.f32 %v2146_v37, %v2314_v58  ;;  %v2323_v37 = vld [vmem:[%s3871_s27 + $0x1d8] sm:$0xff] }
 0x275   : > { %v2501_v49 = vadd.f32 %v2500_v41, %v2438_v38  ;;  %2248 = vst [vmem:[%s3881_s23 + $0x180] sm:$0xff] %v2138_v44  ;;  %v2376_v29 = vsub.f32 %v2138_v44, %v2312_v27  ;;  %v2141_v19 = vadd.f32 %v3876_v36, %v2140_v28 }
 0x276   : > { %2251 = vst [vmem:[%s3881_s23 + $0x198] sm:$0xff] %v2149_v45  ;;  %v2379_v53 = vsub.f32 %v2149_v45, %v2315_v0  ;;  %v2442_v55 = vmul.f32 %v2378_v50, %v2378_v50  ;;  %v2326_v50 = vld [vmem:[%s3871_s27 + $0x1f0] sm:$0xff] }
 0x277   : > { %v2440_v51 = vmul.f32 %v2376_v29, %v2376_v29  ;;  %v2502_v52 = vadd.f32 %v2501_v49, %v2439_v47  ;;  %2249 = vst [vmem:[%s3881_s23 + $0x188] sm:$0xff] %v2141_v19  ;;  %v2377_v2 = vsub.f32 %v2141_v19, %v2313_v61  ;;  %v2324_v47 = vld [vmem:[%s3871_s27 + $0x1e0] sm:$0xff] }
 0x278   : > { %v2443_v60 = vmul.f32 %v2379_v53, %v2379_v53 }
 0x279   : > { %v2503_v30 = vadd.f32 %v2502_v52, %v2440_v51  ;;  %v2441_v20 = vmul.f32 %v2377_v2, %v2377_v2  ;;  %v3141_v54 = vpop.f32.mrb[84].mxu1  ;;  %v2325_v2 = vld [vmem:[%s3871_s27 + $0x1e8] sm:$0xff] }
 0x27a   : > { %v2162_v12 = vadd.f32 %v3141_v54, %v3876_v36  ;;  %v2153_v15 = vpop.f32.mrb[85].mxu1 }
 0x27b   : > { %v2504_v21 = vadd.f32 %v2503_v30, %v2441_v20  ;;  %v2154_v56 = vadd.f32 %v3876_v36, %v2153_v15  ;;  %v3142_v57 = vpop.f32.mrb[86].mxu1 }
 0x27c   : > { %2254 = vst [vmem:[%s3881_s23 + $0x1b0] sm:$0xff] %v2162_v12  ;;  %v2165_v42 = vadd.f32 %v3142_v57, %v3876_v36  ;;  %v2156_v59 = vpop.f32.mrb[87].mxu1  ;;  %v2382_v1 = vsub.f32 %v2162_v12, %v2318_v39  ;;  %v2327_v12 = vld [vmem:[%s3871_s27 + $0x1f8] sm:$0xff]  ;;  %s3350_s27 = scalar_lea.vmem %s3349_s16, 16384 }
 0x27d   : > { %v2505_v22 = vadd.f32 %v2504_v21, %v2442_v55  ;;  %2252 = vst [vmem:[%s3881_s23 + $0x1a0] sm:$0xff] %v2154_v56  ;;  %v2380_v33 = vsub.f32 %v2154_v56, %v2316_v31  ;;  %v2157_v62 = vadd.f32 %v3876_v36, %v2156_v59  ;;  %p3352_p2 = scmp.lt.s32.totalorder %s3350_s27, %s3344_s26 }
 0x27e   : > { %2255 = vst [vmem:[%s3881_s23 + $0x1b8] sm:$0xff] %v2165_v42  ;;  %v2383_v5 = vsub.f32 %v2165_v42, %v2319_v63  ;;  %v2446_v9 = vmul.f32 %v2382_v1, %v2382_v1 }
 0x27f   : > { %v2444_v23 = vmul.f32 %v2380_v33, %v2380_v33  ;;  %v2506_v34 = vadd.f32 %v2505_v22, %v2443_v60  ;;  %2253 = vst [vmem:[%s3881_s23 + $0x1a8] sm:$0xff] %v2157_v62  ;;  %v2381_v3 = vsub.f32 %v2157_v62, %v2317_v32  ;;  %p3353_p3 = por %p3352_p2, %p3351_p1 }
 0x280   : > { %v2447_v26 = vmul.f32 %v2383_v5, %v2383_v5 }
 0x281   : > { %v2507_v4 = vadd.f32 %v2506_v34, %v2444_v23  ;;  %v2445_v35 = vmul.f32 %v2381_v3, %v2381_v3  ;;  %v3145_v6 = vpop.f32.mrb[88].mxu1  ;;  %p3354_p4 = pnand %p3353_p3, %p3347_p0 }
 0x282   : > { %v2178_v7 = vadd.f32 %v3145_v6, %v3876_v36  ;;  %v2169_v24 = vpop.f32.mrb[89].mxu1 }
 0x283   : > { %v2508_v40 = vadd.f32 %v2507_v4, %v2445_v35  ;;  %v2170_v25 = vadd.f32 %v3876_v36, %v2169_v24  ;;  %v3146_v10 = vpop.f32.mrb[90].mxu1 }
 0x284   : > { %2258 = vst [vmem:[%s3881_s23 + $0x1d0] sm:$0xff] %v2178_v7  ;;  %v2181_v11 = vadd.f32 %v3146_v10, %v3876_v36  ;;  %v2172_v16 = vpop.f32.mrb[91].mxu1  ;;  %v2386_v48 = vsub.f32 %v2178_v7, %v2322_v43 }
 0x285   : > { %v2509_v46 = vadd.f32 %v2508_v40, %v2446_v9  ;;  %2256 = vst [vmem:[%s3881_s23 + $0x1c0] sm:$0xff] %v2170_v25  ;;  %v2384_v14 = vsub.f32 %v2170_v25, %v2320_v8  ;;  %v2173_v17 = vadd.f32 %v3876_v36, %v2172_v16 }
 0x286   : > { %2259 = vst [vmem:[%s3881_s23 + $0x1d8] sm:$0xff] %v2181_v11  ;;  %v2387_v18 = vsub.f32 %v2181_v11, %v2323_v37  ;;  %v2450_v49 = vmul.f32 %v2386_v48, %v2386_v48 }
 0x287   : > { %v2448_v27 = vmul.f32 %v2384_v14, %v2384_v14  ;;  %v2510_v38 = vadd.f32 %v2509_v46, %v2447_v26  ;;  %2257 = vst [vmem:[%s3881_s23 + $0x1c8] sm:$0xff] %v2173_v17  ;;  %v2385_v41 = vsub.f32 %v2173_v17, %v2321_v13 }
 0x288   : > { %v2451_v30 = vmul.f32 %v2387_v18, %v2387_v18 }
 0x289   : > { %v2511_v44 = vadd.f32 %v2510_v38, %v2448_v27  ;;  %v2449_v58 = vmul.f32 %v2385_v41, %v2385_v41  ;;  %v3149_v45 = vpop.f32.mrb[92].mxu1 }
 0x28a   : > { %v2194_v28 = vadd.f32 %v3149_v45, %v3876_v36  ;;  %v2185_v61 = vpop.f32.mrb[93].mxu1 }
 0x28b   : > { %v2512_v29 = vadd.f32 %v2511_v44, %v2449_v58  ;;  %v2186_v19 = vadd.f32 %v3876_v36, %v2185_v61  ;;  %v3150_v0 = vpop.f32.mrb[94].mxu1 }
 0x28c   : > { %2262 = vst [vmem:[%s3881_s23 + $0x1f0] sm:$0xff] %v2194_v28  ;;  %v2197_v51 = vadd.f32 %v3150_v0, %v3876_v36  ;;  %v2188_v52 = vpop.f32.mrb[95].mxu1  ;;  %v2390_v15 = vsub.f32 %v2194_v28, %v2326_v50 }
 0x28d   : > { %v2513_v53 = vadd.f32 %v2512_v29, %v2450_v49  ;;  %2260 = vst [vmem:[%s3881_s23 + $0x1e0] sm:$0xff] %v2186_v19  ;;  %v2388_v20 = vsub.f32 %v2186_v19, %v2324_v47  ;;  %v2189_v54 = vadd.f32 %v3876_v36, %v2188_v52 }
 0x28e   : > { %2263 = vst [vmem:[%s3881_s23 + $0x1f8] sm:$0xff] %v2197_v51 }
 0x28f   : > { %v2452_v31 = vmul.f32 %v2388_v20, %v2388_v20  ;;  %v2514_v55 = vadd.f32 %v2513_v53, %v2451_v30  ;;  %2261 = vst [vmem:[%s3881_s23 + $0x1e8] sm:$0xff] %v2189_v54  ;;  %v2389_v21 = vsub.f32 %v2189_v54, %v2325_v2 }
 0x290   : > { %3357 = shalt.err (!%p3354_p4)
}
 0x291   : > { %s3358_s22 = scalar_lea.hbm %s4073_s28, 8192  ;;  %s3362_s17 = scalar_lea.hbm %s4142_s8, 65536 }
 0x292   : > { %p3359_p7 = scmp.ne.s32.totalorder %s4073_s28, %s3358_s22  ;;  %p3363_p10 = scmp.lt.u32.totalorder %s4073_s28, %s4142_s8 }
 0x293   : > { %p3364_p11 = scmp.lt.u32.totalorder %s3362_s17, %s3358_s22  ;;  %p3366_p13 = scmp.lt.u32.totalorder %s3358_s22, %s4073_s28 }
 0x294   : > { %p3360_p8 = pnand %p3359_p7, %p3499_p5 }
 0x295   : > { %p3365_p12 = por %p3364_p11, %p3363_p10 }
 0x296   : > { %p3361_p9 = pneg %p3360_p8 }
 0x297   : > { %p3367_p0 = por %p3366_p13, %p3365_p12 }
 0x299   : > { %p3368_p1 = pnand %p3367_p0, %p3361_p9 }
 0x29b   : > { %3371 = shalt.err (!%p3368_p1)
}
 0x29c   : > { %s3409_s26 = smov 128   ;;  %s3410_s16 = smov 8   ;;  %v2515_v36 = vadd.f32 %v2514_v55, %v2452_v31  ;;  %v2391_v56 = vsub.f32 %v2197_v51, %v2327_v12  ;;  %v2453_v57 = vmul.f32 %v2389_v21, %v2389_v21  ;;  %v2454_v39 = vmul.f32 %v2390_v15, %v2390_v15 }
 0x29d   : > { %3223 = dma.vmem_to_hbm [thread:$0]  (%p3499_p5), %s4075_s21, 8192, %s4073_s28, %s4089_s25, %s3409_s26, %s3409_s26, %s3410_s16  }
 0x29e   : > { %s2662_s27 = sshll.u32 %s4153_s13, 3  ;;  %v2516_v42 = vadd.f32 %v2515_v36, %v2453_v57  ;;  %v2455_v59 = vmul.f32 %v2391_v56, %v2391_v56 }
 0x29f   : > { %s388_s14 = scalar_lea.vmem %s4143_s9, %s2662_s27 }
 0x2a0   : > { %v2517_v32 = vadd.f32 %v2516_v42, %v2454_v39 }
 0x2a2   : > { %v2518_v60 = vadd.f32 %v2517_v32, %v2455_v59 }
 0x2a4   : > { %2519 = vst [vmem:[%s388_s14] sm:$0xff] %v2518_v60 }
 0x2a5 PF: > { %p3229_p2 = scmp.ge.s32.totalorder %s3406_s12, 2  ;;  %s2556_s19 = sand.u32 1, %s3394_s30  }
 0x2a6   : > { %s2557_s21 = scalar_lea.sflag [#allocation3], %s2556_s19 }
 0x2a7   : > { %p3226_p5 = pnand %p3229_p2, %p3503_p6 }
 0x2a9   : > { %3389 = dma.done.wait (!%p3226_p5), %s2557_s21, 8192  }
 0x2aa   : > { %3391 = vsyncadd (!%p3226_p5), %s2557_s21, 4294959104  ;;  %p20_p3 = scmp.ge.s32.totalorder %s3486_s15, 10   ;;  %s4146_s30 = smov %s3398_s10 }
 0x2ab   : > { %s4147_s10 = smov %s3402_s11  ;;  %s4148_s11 = smov %s3497_s18 }
 0x2ac   : > { %s4149_s12 = smov %s3486_s15  ;;  %22 = sbr.rel (!%p20_p3) target bundleno = 3 (0x3), region = 105 }
 0x2b3   :  { %2569 = vsyncpa [#allocation3], 1 }
 0x2b4   :  { %2571 = vsyncpa [#allocation3 + $0x1], 1 }

</bundles_post_ra>
